<compile_context>
chip_gen: v5e
topology: v5e:2x2
jax: 0.10.0
libtpu: 0.0.40
codegen_flags: <defaults>
</compile_context>

<pallas_src>
import math

import jax
import jax.numpy as jnp
from jax import lax
from jax.experimental import pallas as pl
from jax.experimental.pallas import tpu as pltpu

PI = 0.5
SIGMA_1 = math.exp(-0.0)      # 1.0
SIGMA_2 = math.exp(-6.0)
LOG_SIGMA_1 = math.log(SIGMA_1)
LOG_SIGMA_2 = math.log(SIGMA_2)
INV_2S1_SQ = 1.0 / (2.0 * SIGMA_1 ** 2)
INV_2S2_SQ = 1.0 / (2.0 * SIGMA_2 ** 2)
NEG_HALF_LOG_2PI = -0.5 * math.log(2.0 * math.pi)


def _round_up(v, m):
    return ((v + m - 1) // m) * m


def _softplus(x):
    # Numerically stable softplus: 1 exp + 1 log1p on the EUP.
    return jnp.maximum(x, 0.0) + jnp.log1p(jnp.exp(-jnp.abs(x)))


def _mixture_logprob(v):
    # log(PI*N(v;0,s1) + (1-PI)*N(v;0,s2)) == lp1 + log(PI + (1-PI)*exp(lp2-lp1))
    # lp2 - lp1 <= 6, so exp never overflows; underflow gives log(PI), not -inf.
    q = v * v
    lp1 = NEG_HALF_LOG_2PI - LOG_SIGMA_1 - q * INV_2S1_SQ
    lp2 = NEG_HALF_LOG_2PI - LOG_SIGMA_2 - q * INV_2S2_SQ
    return lp1 + jnp.log(PI + (1.0 - PI) * jnp.exp(lp2 - lp1))


# ---------------------------------------------------------------------------
# Fused kernel, trace-time specialized on (sample, calculate_log_probs).
# Grid: (out_pad // tile_out,) over output-feature tiles (parallel).
# Ref order: x, wmu, [wrho], [weps], bmu, [brho], [beps], y, [lp_part, lvp_part]
# ---------------------------------------------------------------------------
def _make_bnn_kernel(*, sample, clp):
    need_rho = sample or clp
    f32 = jnp.float32

    def kernel(*refs):
        refs = list(refs)
        x_ref = refs.pop(0)
        wmu_ref = refs.pop(0)
        wrho_ref = refs.pop(0) if need_rho else None
        weps_ref = refs.pop(0) if sample else None
        bmu_ref = refs.pop(0)
        brho_ref = refs.pop(0) if need_rho else None
        beps_ref = refs.pop(0) if sample else None
        y_ref = refs.pop(0)
        lp_ref = refs.pop(0) if clp else None
        lvp_ref = refs.pop(0) if clp else None

        # ---- reparameterized sample (elementwise math in f32) ---------------
        wmu = wmu_ref[...].astype(f32)                     # (K_pad, tile_out)
        bmu = bmu_ref[...].astype(f32)                     # (1, tile_out)
        if need_rho:
            w_sigma = _softplus(wrho_ref[...].astype(f32))
            b_sigma = _softplus(brho_ref[...].astype(f32))
        if sample:
            w_eps = weps_ref[...].astype(f32)
            b_eps = beps_ref[...].astype(f32)
            w = wmu + w_sigma * w_eps
            b = bmu + b_sigma * b_eps
        else:
            w = wmu
            b = bmu

        # ---- log-prob partial sums (padded elements corrected in wrapper) ---
        if clp:
            if sample:
                # (v - mu)^2 / (2 sigma^2) == 0.5 * eps^2  -> no divide
                w_lvp = NEG_HALF_LOG_2PI - jnp.log(w_sigma) - 0.5 * w_eps * w_eps
                b_lvp = NEG_HALF_LOG_2PI - jnp.log(b_sigma) - 0.5 * b_eps * b_eps
            else:
                w_lvp = NEG_HALF_LOG_2PI - jnp.log(w_sigma)
                b_lvp = NEG_HALF_LOG_2PI - jnp.log(b_sigma)
            lp_sum = jnp.sum(_mixture_logprob(w)) + jnp.sum(_mixture_logprob(b))
            lvp_sum = jnp.sum(w_lvp) + jnp.sum(b_lvp)
            lp_ref[...] = jnp.broadcast_to(lp_sum, lp_ref.shape)
            lvp_ref[...] = jnp.broadcast_to(lvp_sum, lvp_ref.shape)

        # ---- linear: w is already (K_pad, tile_out) -> plain NN matmul ------
        y = lax.dot_general(x_ref[...], w, (((1,), (0,)), ((), ())),
                            preferred_element_type=f32)
        y_ref[...] = y + b

    return kernel


# ---------------------------------------------------------------------------
# BNNLayer forward wrapper
# ---------------------------------------------------------------------------
def bnn_layer_forward(params, x, eps_w=None, eps_b=None, sample=True,
                      calculate_log_probs=True,
                      param_dtype=jnp.bfloat16,
                      vmem_budget_bytes=24 * 1024 * 1024):
    """Returns (output, log_prior, log_variational_posterior)."""
    weight_mu, weight_rho, bias_mu, bias_rho = params
    out_f, in_f = weight_mu.shape
    B = x.shape[0]
    f32 = jnp.float32
    sample = bool(sample)
    clp = bool(calculate_log_probs)
    need_rho = sample or clp
    if sample and (eps_w is None or eps_b is None):
        raise ValueError("sample=True requires eps_w and eps_b")

    # ---- pad to TPU-friendly shapes (lane dims x128, sublane x8) -----------
    K_pad = _round_up(in_f, 128)
    B_pad = _round_up(B, 8)

    pbytes = jnp.dtype(param_dtype).itemsize
    n_w_streams = 1 + int(need_rho) + int(sample)
    # Per-out-column VMEM bytes: double-buffered weight streams + y tile + bias.
    per_col = n_w_streams * 2 * K_pad * pbytes + 2 * B_pad * 4 + n_w_streams * 2 * 8 * 4
    fixed = 2 * B_pad * K_pad * 4 + 4 * 8 * 128 * 4          # x block + partials
    avail = max(vmem_budget_bytes - fixed, per_col * 128)
    tile_out = max(128, min(1024, (avail // per_col) // 128 * 128))
    tile_out = min(tile_out, _round_up(out_f, 128))
    out_pad = _round_up(out_f, tile_out)
    n_tiles = out_pad // tile_out

    # Explicit VMEM limit from the real footprint (generation-safe: <= 48 MiB).
    footprint = (n_w_streams * 2 * K_pad * tile_out * pbytes   # weight streams
                 + n_w_streams * 2 * 8 * tile_out * 4          # bias streams
                 + 2 * B_pad * K_pad * 4                       # x block
                 + 2 * B_pad * tile_out * 4                    # y tile
                 + 4 * 8 * 128 * 4)                            # partial outs
    vmem_limit = int(min(48 * 1024 * 1024,
                         max(footprint + footprint // 4 + (2 << 20),
                             16 * 1024 * 1024)))

    def pad_t(a):   # (out_f, in_f) -> (K_pad, out_pad) in param_dtype
        a = a.astype(f32).T
        a = jnp.pad(a, ((0, K_pad - in_f), (0, out_pad - out_f)))
        return a.astype(param_dtype)

    def pad_b(a):   # (out_f,) -> (1, out_pad) in f32 (tiny, keep full precision)
        a = a.astype(f32).reshape(1, out_f)
        return jnp.pad(a, ((0, 0), (0, out_pad - out_f)))

    x_p = jnp.pad(x.astype(f32), ((0, B_pad - B), (0, K_pad - in_f)))

    inputs = [x_p, pad_t(weight_mu)]
    if need_rho:
        inputs.append(pad_t(weight_rho))
    if sample:
        inputs.append(pad_t(eps_w))
    inputs.append(pad_b(bias_mu))
    if need_rho:
        inputs.append(pad_b(bias_rho))
    if sample:
        inputs.append(pad_b(eps_b))

    x_spec = pl.BlockSpec((B_pad, K_pad), lambda i: (0, 0))
    w_spec = pl.BlockSpec((K_pad, tile_out), lambda i: (0, i))
    b_spec = pl.BlockSpec((1, tile_out), lambda i: (0, i))
    in_specs = [x_spec, w_spec]
    if need_rho:
        in_specs.append(w_spec)
    if sample:
        in_specs.append(w_spec)
    in_specs.append(b_spec)
    if need_rho:
        in_specs.append(b_spec)
    if sample:
        in_specs.append(b_spec)

    out_shape = [jax.ShapeDtypeStruct((B_pad, out_pad), f32)]
    out_specs = [pl.BlockSpec((B_pad, tile_out), lambda i: (0, i))]
    if clp:
        # Per-tile partial sums (lane-dense (8,128) blocks, lanes beyond 0 are
        # just the same broadcast scalar) -> grid axis can be "parallel".
        part_shape = jax.ShapeDtypeStruct((n_tiles, 8, 128), f32)
        part_spec = pl.BlockSpec((1, 8, 128), lambda i: (i, 0, 0))
        out_shape += [part_shape, part_shape]
        out_specs += [part_spec, part_spec]

    kernel = _make_bnn_kernel(sample=sample, clp=clp)

    results = pl.pallas_call(
        kernel,
        out_shape=tuple(out_shape),
        grid_spec=pltpu.PrefetchScalarGridSpec(
            num_scalar_prefetch=0,
            grid=(n_tiles,),
            in_specs=in_specs,
            out_specs=tuple(out_specs),
        ),
        compiler_params=pltpu.CompilerParams(
            dimension_semantics=("parallel",),   # no carried state -> megacore OK
            vmem_limit_bytes=vmem_limit,
        ),
    )(*inputs)

    if clp:
        y_p, lp_parts, lvp_parts = results
    else:
        y_p = results[0] if isinstance(results, (list, tuple)) else results

    out = y_p[:B, :out_f]
    if not clp:
        return out, jnp.float32(0.0), jnp.float32(0.0)

    lp = jnp.sum(lp_parts[:, 0, 0])
    lvp = jnp.sum(lvp_parts[:, 0, 0])

    # Analytic correction for zero-padded elements (mu = rho = eps = 0):
    # each contributes softplus(0)=log 2 based lvp and mixture_logprob(0) lp.
    n_pad = (K_pad * out_pad - in_f * out_f) + (out_pad - out_f)
    if n_pad:
        zero = jnp.float32(0.0)
        sigma0 = _softplus(zero)
        lvp0 = NEG_HALF_LOG_2PI - jnp.log(sigma0)
        lp0 = _mixture_logprob(zero)
        lp = lp - n_pad * lp0
        lvp = lvp - n_pad * lvp0
    return out, lp, lvp


# ---------------------------------------------------------------------------
# Pure-JAX reference (mirrors the PyTorch math) for correctness checking
# ---------------------------------------------------------------------------
def _reference(params, x, eps_w, eps_b):
    weight_mu, weight_rho, bias_mu, bias_rho = params
    sig_w = jnp.log1p(jnp.exp(weight_rho))
    sig_b = jnp.log1p(jnp.exp(bias_rho))
    w = weight_mu + sig_w * eps_w
    b = bias_mu + sig_b * eps_b

    def gauss_lp(val, mu, sigma):
        return jnp.sum(NEG_HALF_LOG_2PI - jnp.log(sigma)
                       - (val - mu) ** 2 / (2.0 * sigma ** 2))

    def mix_lp(val):
        lp1 = NEG_HALF_LOG_2PI - math.log(SIGMA_1) - val ** 2 / (2 * SIGMA_1 ** 2)
        lp2 = NEG_HALF_LOG_2PI - math.log(SIGMA_2) - val ** 2 / (2 * SIGMA_2 ** 2)
        return jnp.sum(jnp.log(PI * jnp.exp(lp1) + (1 - PI) * jnp.exp(lp2)))

    log_prior = mix_lp(w) + mix_lp(b)
    log_vp = gauss_lp(w, weight_mu, sig_w) + gauss_lp(b, bias_mu, sig_b)
    out = x @ w.T + b
    return out, log_prior, log_vp


if __name__ == "__main__":
    in_features = 32
    out_features = 64
    batch = 8

    key = jax.random.PRNGKey(0)
    k_wmu, k_wrho, k_bmu, k_brho, k_x, k_ew, k_eb = jax.random.split(key, 7)

    def bf16_round(a):
        # Weight-sized tensors are streamed as bf16; pre-round them so the
        # f32 reference sees exactly the values the kernel sees.
        return a.astype(jnp.bfloat16).astype(jnp.float32)

    # Deterministic parameter init mirroring the PyTorch __init__ ranges.
    weight_mu = bf16_round(jax.random.uniform(k_wmu, (out_features, in_features),
                                              jnp.float32, -0.2, 0.2))
    weight_rho = bf16_round(jax.random.uniform(k_wrho, (out_features, in_features),
                                               jnp.float32, -5.0, -4.0))
    bias_mu = jax.random.uniform(k_bmu, (out_features,), jnp.float32, -0.2, 0.2)
    bias_rho = jax.random.uniform(k_brho, (out_features,), jnp.float32, -5.0, -4.0)
    params = (weight_mu, weight_rho, bias_mu, bias_rho)

    x = jax.random.normal(k_x, (batch, in_features), jnp.float32)
    eps_w = bf16_round(jax.random.normal(k_ew, (out_features, in_features), jnp.float32))
    eps_b = jax.random.normal(k_eb, (out_features,), jnp.float32)

    # --- sample=True, calculate_log_probs=True (training path) --------------
    out, lp, lvp = bnn_layer_forward(params, x, eps_w, eps_b,
                                     sample=True, calculate_log_probs=True)
    jax.block_until_ready((out, lp, lvp))
    ref_out, ref_lp, ref_lvp = _reference(params, x, eps_w, eps_b)
    assert out.shape == (batch, out_features)
    assert jnp.allclose(out, ref_out, atol=1e-4, rtol=1e-4)
    assert jnp.allclose(lp, ref_lp, atol=5e-2, rtol=1e-4)
    assert jnp.allclose(lvp, ref_lvp, atol=5e-2, rtol=1e-4)

    # --- sample=False, calculate_log_probs=True ------------------------------
    out2, lp2, lvp2 = bnn_layer_forward(params, x, None, None,
                                        sample=False, calculate_log_probs=True)
    ref_out2, ref_lp2, ref_lvp2 = _reference(params, x,
                                             jnp.zeros_like(eps_w),
                                             jnp.zeros_like(eps_b))
    assert jnp.allclose(out2, ref_out2, atol=1e-4, rtol=1e-4)
    assert jnp.allclose(lp2, ref_lp2, atol=5e-2, rtol=1e-4)
    assert jnp.allclose(lvp2, ref_lvp2, atol=5e-2, rtol=1e-4)

    # --- sample=True, calculate_log_probs=False (no log-prob math emitted) ---
    out3, lp3, lvp3 = bnn_layer_forward(params, x, eps_w, eps_b,
                                        sample=True, calculate_log_probs=False)
    assert jnp.allclose(out3, ref_out, atol=1e-4, rtol=1e-4)
    assert float(lp3) == 0.0 and float(lvp3) == 0.0

    # --- sample=False, calculate_log_probs=False (pure linear, mu only) ------
    out4, _, _ = bnn_layer_forward(params, x, None, None,
                                   sample=False, calculate_log_probs=False)
    assert jnp.allclose(out4, ref_out2, atol=1e-4, rtol=1e-4)

    jax.block_until_ready((out2, out3, out4))
    print("KERNEL_OK")
</pallas_src>

<mosaic_0001>
module attributes {stable_mosaic.version = 11 : i64} {
  func.func @kernel(%arg0: i32, %arg1: memref<8x128xf32, #tpu.memory_space<vmem>>, %arg2: memref<128x128xbf16, #tpu.memory_space<vmem>>, %arg3: memref<128x128xbf16, #tpu.memory_space<vmem>>, %arg4: memref<128x128xbf16, #tpu.memory_space<vmem>>, %arg5: memref<1x128xf32, #tpu.memory_space<vmem>>, %arg6: memref<1x128xf32, #tpu.memory_space<vmem>>, %arg7: memref<1x128xf32, #tpu.memory_space<vmem>>, %arg8: memref<8x128xf32, #tpu.memory_space<vmem>>, %arg9: memref<1x8x128xf32, #tpu.memory_space<vmem>>, %arg10: memref<1x8x128xf32, #tpu.memory_space<vmem>>) attributes {dimension_semantics = [#tpu.dimension_semantics<parallel>], iteration_bounds = array<i64: 1>, scalar_prefetch = 0 : i64, scratch_operands = 0 : i64, tpu.core_type = #tpu.core_type<tc>, window_params = [{pipeline_mode = #tpu.pipeline_mode<synchronous>, transform_indices = @transform_0, window_bounds = array<i64: 8, 128>}, {transform_indices = @transform_1, window_bounds = array<i64: 128, 128>}, {transform_indices = @transform_2, window_bounds = array<i64: 128, 128>}, {transform_indices = @transform_3, window_bounds = array<i64: 128, 128>}, {transform_indices = @transform_4, window_bounds = array<i64: 1, 128>}, {transform_indices = @transform_5, window_bounds = array<i64: 1, 128>}, {transform_indices = @transform_6, window_bounds = array<i64: 1, 128>}, {transform_indices = @transform_7, window_bounds = array<i64: 8, 128>}, {transform_indices = @transform_8, window_bounds = array<i64: 1, 8, 128>}, {transform_indices = @transform_9, window_bounds = array<i64: 1, 8, 128>}]} {
    %c0 = arith.constant 0 : index
    %c0_0 = arith.constant 0 : index
    %0 = vector.load %arg2[%c0, %c0_0] : memref<128x128xbf16, #tpu.memory_space<vmem>>, vector<128x128xbf16>
    %1 = arith.extf %0 : vector<128x128xbf16> to vector<128x128xf32>
    %c0_1 = arith.constant 0 : index
    %c0_2 = arith.constant 0 : index
    %2 = vector.load %arg5[%c0_1, %c0_2] : memref<1x128xf32, #tpu.memory_space<vmem>>, vector<1x128xf32>
    %c0_3 = arith.constant 0 : index
    %c0_4 = arith.constant 0 : index
    %3 = vector.load %arg3[%c0_3, %c0_4] : memref<128x128xbf16, #tpu.memory_space<vmem>>, vector<128x128xbf16>
    %4 = arith.extf %3 : vector<128x128xbf16> to vector<128x128xf32>
    %cst = arith.constant 0.000000e+00 : f32
    %5 = vector.broadcast %cst : f32 to vector<128x128xf32>
    %6 = arith.maximumf %4, %5 : vector<128x128xf32>
    %7 = math.absf %4 : vector<128x128xf32>
    %cst_5 = arith.constant 0.000000e+00 : f32
    %8 = vector.broadcast %cst_5 : f32 to vector<128x128xf32>
    %9 = arith.subf %8, %7 : vector<128x128xf32>
    %10 = math.exp %9 : vector<128x128xf32>
    %11 = math.log1p %10 : vector<128x128xf32>
    %12 = arith.addf %6, %11 : vector<128x128xf32>
    %c0_6 = arith.constant 0 : index
    %c0_7 = arith.constant 0 : index
    %13 = vector.load %arg6[%c0_6, %c0_7] : memref<1x128xf32, #tpu.memory_space<vmem>>, vector<1x128xf32>
    %cst_8 = arith.constant 0.000000e+00 : f32
    %14 = vector.broadcast %cst_8 : f32 to vector<1x128xf32>
    %15 = arith.maximumf %13, %14 : vector<1x128xf32>
    %16 = math.absf %13 : vector<1x128xf32>
    %cst_9 = arith.constant 0.000000e+00 : f32
    %17 = vector.broadcast %cst_9 : f32 to vector<1x128xf32>
    %18 = arith.subf %17, %16 : vector<1x128xf32>
    %19 = math.exp %18 : vector<1x128xf32>
    %20 = math.log1p %19 : vector<1x128xf32>
    %21 = arith.addf %15, %20 : vector<1x128xf32>
    %c0_10 = arith.constant 0 : index
    %c0_11 = arith.constant 0 : index
    %22 = vector.load %arg4[%c0_10, %c0_11] : memref<128x128xbf16, #tpu.memory_space<vmem>>, vector<128x128xbf16>
    %23 = arith.extf %22 : vector<128x128xbf16> to vector<128x128xf32>
    %c0_12 = arith.constant 0 : index
    %c0_13 = arith.constant 0 : index
    %24 = vector.load %arg7[%c0_12, %c0_13] : memref<1x128xf32, #tpu.memory_space<vmem>>, vector<1x128xf32>
    %25 = arith.mulf %12, %23 : vector<128x128xf32>
    %26 = arith.addf %1, %25 : vector<128x128xf32>
    %27 = arith.mulf %21, %24 : vector<1x128xf32>
    %28 = arith.addf %2, %27 : vector<1x128xf32>
    %29 = math.log %12 : vector<128x128xf32>
    %cst_14 = arith.constant -0.918938517 : f32
    %30 = vector.broadcast %cst_14 : f32 to vector<128x128xf32>
    %31 = arith.subf %30, %29 : vector<128x128xf32>
    %cst_15 = arith.constant 5.000000e-01 : f32
    %32 = vector.broadcast %cst_15 : f32 to vector<128x128xf32>
    %33 = arith.mulf %32, %23 : vector<128x128xf32>
    %34 = arith.mulf %33, %23 : vector<128x128xf32>
    %35 = arith.subf %31, %34 : vector<128x128xf32>
    %36 = math.log %21 : vector<1x128xf32>
    %cst_16 = arith.constant -0.918938517 : f32
    %37 = vector.broadcast %cst_16 : f32 to vector<1x128xf32>
    %38 = arith.subf %37, %36 : vector<1x128xf32>
    %cst_17 = arith.constant 5.000000e-01 : f32
    %39 = vector.broadcast %cst_17 : f32 to vector<1x128xf32>
    %40 = arith.mulf %39, %24 : vector<1x128xf32>
    %41 = arith.mulf %40, %24 : vector<1x128xf32>
    %42 = arith.subf %38, %41 : vector<1x128xf32>
    %43 = arith.mulf %26, %26 : vector<128x128xf32>
    %cst_18 = arith.constant 5.000000e-01 : f32
    %44 = vector.broadcast %cst_18 : f32 to vector<128x128xf32>
    %45 = arith.mulf %43, %44 : vector<128x128xf32>
    %cst_19 = arith.constant -0.918938517 : f32
    %46 = vector.broadcast %cst_19 : f32 to vector<128x128xf32>
    %47 = arith.subf %46, %45 : vector<128x128xf32>
    %cst_20 = arith.constant 81377.3984 : f32
    %48 = vector.broadcast %cst_20 : f32 to vector<128x128xf32>
    %49 = arith.mulf %43, %48 : vector<128x128xf32>
    %cst_21 = arith.constant 5.08106136 : f32
    %50 = vector.broadcast %cst_21 : f32 to vector<128x128xf32>
    %51 = arith.subf %50, %49 : vector<128x128xf32>
    %52 = arith.subf %51, %47 : vector<128x128xf32>
    %53 = math.exp %52 : vector<128x128xf32>
    %cst_22 = arith.constant 5.000000e-01 : f32
    %54 = vector.broadcast %cst_22 : f32 to vector<128x128xf32>
    %55 = arith.mulf %54, %53 : vector<128x128xf32>
    %cst_23 = arith.constant 5.000000e-01 : f32
    %56 = vector.broadcast %cst_23 : f32 to vector<128x128xf32>
    %57 = arith.addf %56, %55 : vector<128x128xf32>
    %58 = math.log %57 : vector<128x128xf32>
    %59 = arith.addf %47, %58 : vector<128x128xf32>
    %60 = vector.shape_cast %59 : vector<128x128xf32> to vector<1x128x128xf32>
    %cst_24 = arith.constant dense<0.000000e+00> : vector<1xf32>
    %61 = vector.multi_reduction <add>, %60, %cst_24 [1, 2] : vector<1x128x128xf32> to vector<1xf32>
    %62 = vector.shape_cast %61 : vector<1xf32> to vector<1x1x1xf32>
    %63 = vector.extract %62[0, 0, 0] : f32 from vector<1x1x1xf32>
    %64 = arith.mulf %28, %28 : vector<1x128xf32>
    %cst_25 = arith.constant 5.000000e-01 : f32
    %65 = vector.broadcast %cst_25 : f32 to vector<1x128xf32>
    %66 = arith.mulf %64, %65 : vector<1x128xf32>
    %cst_26 = arith.constant -0.918938517 : f32
    %67 = vector.broadcast %cst_26 : f32 to vector<1x128xf32>
    %68 = arith.subf %67, %66 : vector<1x128xf32>
    %cst_27 = arith.constant 81377.3984 : f32
    %69 = vector.broadcast %cst_27 : f32 to vector<1x128xf32>
    %70 = arith.mulf %64, %69 : vector<1x128xf32>
    %cst_28 = arith.constant 5.08106136 : f32
    %71 = vector.broadcast %cst_28 : f32 to vector<1x128xf32>
    %72 = arith.subf %71, %70 : vector<1x128xf32>
    %73 = arith.subf %72, %68 : vector<1x128xf32>
    %74 = math.exp %73 : vector<1x128xf32>
    %cst_29 = arith.constant 5.000000e-01 : f32
    %75 = vector.broadcast %cst_29 : f32 to vector<1x128xf32>
    %76 = arith.mulf %75, %74 : vector<1x128xf32>
    %cst_30 = arith.constant 5.000000e-01 : f32
    %77 = vector.broadcast %cst_30 : f32 to vector<1x128xf32>
    %78 = arith.addf %77, %76 : vector<1x128xf32>
    %79 = math.log %78 : vector<1x128xf32>
    %80 = arith.addf %68, %79 : vector<1x128xf32>
    %81 = vector.shape_cast %80 : vector<1x128xf32> to vector<1x1x128xf32>
    %cst_31 = arith.constant dense<0.000000e+00> : vector<1xf32>
    %82 = vector.multi_reduction <add>, %81, %cst_31 [1, 2] : vector<1x1x128xf32> to vector<1xf32>
    %83 = vector.shape_cast %82 : vector<1xf32> to vector<1x1x1xf32>
    %84 = vector.extract %83[0, 0, 0] : f32 from vector<1x1x1xf32>
    %85 = arith.addf %63, %84 : f32
    %86 = vector.shape_cast %35 : vector<128x128xf32> to vector<1x128x128xf32>
    %cst_32 = arith.constant dense<0.000000e+00> : vector<1xf32>
    %87 = vector.multi_reduction <add>, %86, %cst_32 [1, 2] : vector<1x128x128xf32> to vector<1xf32>
    %88 = vector.shape_cast %87 : vector<1xf32> to vector<1x1x1xf32>
    %89 = vector.extract %88[0, 0, 0] : f32 from vector<1x1x1xf32>
    %90 = vector.shape_cast %42 : vector<1x128xf32> to vector<1x1x128xf32>
    %cst_33 = arith.constant dense<0.000000e+00> : vector<1xf32>
    %91 = vector.multi_reduction <add>, %90, %cst_33 [1, 2] : vector<1x1x128xf32> to vector<1xf32>
    %92 = vector.shape_cast %91 : vector<1xf32> to vector<1x1x1xf32>
    %93 = vector.extract %92[0, 0, 0] : f32 from vector<1x1x1xf32>
    %94 = arith.addf %89, %93 : f32
    %95 = vector.broadcast %85 : f32 to vector<1x8x128xf32>
    %c0_34 = arith.constant 0 : index
    %c0_35 = arith.constant 0 : index
    %c0_36 = arith.constant 0 : index
    %96 = vector.load %arg9[%c0_34, %c0_35, %c0_36] : memref<1x8x128xf32, #tpu.memory_space<vmem>>, vector<1x8x128xf32>
    tpu.vector_store %arg9[%c0_34, %c0_35, %c0_36], %95 {strides = array<i32>} : memref<1x8x128xf32, #tpu.memory_space<vmem>>, vector<1x8x128xf32>,
    %97 = vector.broadcast %94 : f32 to vector<1x8x128xf32>
    %c0_37 = arith.constant 0 : index
    %c0_38 = arith.constant 0 : index
    %c0_39 = arith.constant 0 : index
    %98 = vector.load %arg10[%c0_37, %c0_38, %c0_39] : memref<1x8x128xf32, #tpu.memory_space<vmem>>, vector<1x8x128xf32>
    tpu.vector_store %arg10[%c0_37, %c0_38, %c0_39], %97 {strides = array<i32>} : memref<1x8x128xf32, #tpu.memory_space<vmem>>, vector<1x8x128xf32>,
    %c0_40 = arith.constant 0 : index
    %c0_41 = arith.constant 0 : index
    %99 = vector.load %arg1[%c0_40, %c0_41] : memref<8x128xf32, #tpu.memory_space<vmem>>, vector<8x128xf32>
    %cst_42 = arith.constant dense<0.000000e+00> : vector<8x128xf32>
    %100 = tpu.matmul %99, %26, %cst_42 {dimension_numbers = #tpu.dot_dimension_numbers<[1], [0], [0], [1], [0, 0, 1, 1], [], []>} : vector<8x128xf32>, vector<128x128xf32>, vector<8x128xf32> -> vector<8x128xf32>
    %101 = vector.broadcast %28 : vector<1x128xf32> to vector<8x128xf32>
    %102 = arith.addf %100, %101 : vector<8x128xf32>
    %c0_43 = arith.constant 0 : index
    %c0_44 = arith.constant 0 : index
    %103 = vector.load %arg8[%c0_43, %c0_44] : memref<8x128xf32, #tpu.memory_space<vmem>>, vector<8x128xf32>
    tpu.vector_store %arg8[%c0_43, %c0_44], %102 {strides = array<i32>} : memref<8x128xf32, #tpu.memory_space<vmem>>, vector<8x128xf32>,
    return
  }
  func.func @transform_0(%arg0: i32) -> (i32, i32) {
    %c0_i32 = arith.constant 0 : i32
    %c0_i32_0 = arith.constant 0 : i32
    %c0_i32_1 = arith.constant 0 : i32
    return %c0_i32, %c0_i32_0 : i32, i32
  }
  func.func @transform_1(%arg0: i32) -> (i32, i32) {
    %c0_i32 = arith.constant 0 : i32
    %c0_i32_0 = arith.constant 0 : i32
    return %c0_i32, %arg0 : i32, i32
  }
  func.func @transform_2(%arg0: i32) -> (i32, i32) {
    %c0_i32 = arith.constant 0 : i32
    %c0_i32_0 = arith.constant 0 : i32
    return %c0_i32, %arg0 : i32, i32
  }
  func.func @transform_3(%arg0: i32) -> (i32, i32) {
    %c0_i32 = arith.constant 0 : i32
    %c0_i32_0 = arith.constant 0 : i32
    return %c0_i32, %arg0 : i32, i32
  }
  func.func @transform_4(%arg0: i32) -> (i32, i32) {
    %c0_i32 = arith.constant 0 : i32
    %c0_i32_0 = arith.constant 0 : i32
    return %c0_i32, %arg0 : i32, i32
  }
  func.func @transform_5(%arg0: i32) -> (i32, i32) {
    %c0_i32 = arith.constant 0 : i32
    %c0_i32_0 = arith.constant 0 : i32
    return %c0_i32, %arg0 : i32, i32
  }
  func.func @transform_6(%arg0: i32) -> (i32, i32) {
    %c0_i32 = arith.constant 0 : i32
    %c0_i32_0 = arith.constant 0 : i32
    return %c0_i32, %arg0 : i32, i32
  }
  func.func @transform_7(%arg0: i32) -> (i32, i32) {
    %c0_i32 = arith.constant 0 : i32
    %c0_i32_0 = arith.constant 0 : i32
    return %c0_i32, %arg0 : i32, i32
  }
  func.func @transform_8(%arg0: i32) -> (i32, i32, i32) {
    %c0_i32 = arith.constant 0 : i32
    %c0_i32_0 = arith.constant 0 : i32
    %c0_i32_1 = arith.constant 0 : i32
    return %arg0, %c0_i32, %c0_i32_0 : i32, i32, i32
  }
  func.func @transform_9(%arg0: i32) -> (i32, i32, i32) {
    %c0_i32 = arith.constant 0 : i32
    %c0_i32_0 = arith.constant 0 : i32
    %c0_i32_1 = arith.constant 0 : i32
    return %arg0, %c0_i32, %c0_i32_0 : i32, i32, i32
  }
}

</mosaic_0001>

<bundles_post_ra>
// kernel: tpu_custom_call.1
= control target key start
LH: loop header
LB: loop body
LE: loop exit
PB: predicated region body
PF: predicated region fallthrough
CT: control target
= control target key end

     0   :  { %15 = vsyncpa [#allocation3], 0  ;;  %s2260_s0 = inlined_call_operand.hbm [shape: f32[8,128], index: 0, kind: input, shape index: {}]   ;;  %s2261_s1 = inlined_call_operand.hbm [shape: bf16[128,128], index: 1, kind: input, shape index: {}]   ;;  %s2262_s2 = inlined_call_operand.hbm [shape: bf16[128,128], index: 2, kind: input, shape index: {}]   ;;  %s2263_s3 = inlined_call_operand.hbm [shape: bf16[128,128], index: 3, kind: input, shape index: {}]   ;;  %s2264_s4 = inlined_call_operand.vmem [shape: f32[1,128], index: 4, kind: input, shape index: {}]   ;;  %s2265_s5 = inlined_call_operand.vmem [shape: f32[1,128], index: 5, kind: input, shape index: {}]   ;;  %s2266_s6 = inlined_call_operand.vmem [shape: f32[1,128], index: 6, kind: input, shape index: {}]   ;;  %s2267_s7 = inlined_call_operand.hbm [shape: f32[8,128], index: 7, kind: output, shape index: {0}]   ;;  %s2268_s8 = inlined_call_operand.hbm [shape: f32[1,8,128], index: 8, kind: output, shape index: {1}]   ;;  %s2269_s9 = inlined_call_operand.hbm [shape: f32[1,8,128], index: 9, kind: output, shape index: {2}]  }
   0x1   :  { %16 = vsyncpa [#allocation6], 0 }
   0x2   :  { %17 = vsyncpa [#allocation9], 0 }
   0x3   :  { %18 = vsyncpa [#allocation4], 0  ;;  %s35_s11 = sshll.u32 %s2261_s1, 4  ;;  %s36_s11 = int_to_ptr.hbm [resolvable:$true] %s35_s11 }
   0x4   :  { %19 = vsyncpa [#allocation12], 0  ;;  %s1435_s12 = smov [#allocation5]   ;;  %s25_s16 = sshll.u32 %s2260_s0, 4  ;;  %s26_s16 = int_to_ptr.hbm [resolvable:$true] %s25_s16 }
   0x5   :  { %s37_s13 = sshll.u32 %s1435_s12, 4  ;;  %s1436_s17 = smov 64   ;;  %s38_s13 = int_to_ptr.vmem [resolvable:$true] %s37_s13 }
   0x6   :  { %s1437_s18 = smov 4   ;;  %s1438_s19 = smov [#allocation2]  }
   0x7   :  { %43 = dma.hbm_to_vmem [thread:$0]  %s36_s11, 1024, %s38_s13, [#allocation6], %s1436_s17, %s1436_s17, %s1437_s18  }
   0x8   :  { %s27_s20 = sshll.u32 %s1438_s19, 4  ;;  %s48_s23 = sshll.u32 %s2262_s2, 4  ;;  %s28_s20 = int_to_ptr.vmem [resolvable:$true] %s27_s20  ;;  %s49_s23 = int_to_ptr.hbm [resolvable:$true] %s48_s23 }
   0x9   :  { %30 = dma.hbm_to_vmem [thread:$0]  %s26_s16, 128, %s28_s20, [#allocation3]  }
   0xa   :  { %s61_s25 = sshll.u32 %s2263_s3, 4  ;;  %s1439_s26 = smov [#allocation7]   ;;  %s62_s25 = int_to_ptr.hbm [resolvable:$true] %s61_s25 }
   0xb   :  { %s50_s27 = sshll.u32 %s1439_s26, 4  ;;  %s1440_s0 = smov [#allocation8]   ;;  %s51_s27 = int_to_ptr.vmem [resolvable:$true] %s50_s27 }
   0xc   :  { %56 = dma.hbm_to_vmem [thread:$0]  %s49_s23, 1024, %s51_s27, [#allocation6], %s1436_s17, %s1436_s17, %s1437_s18  }
   0xd   :  { %s63_s28 = sshll.u32 %s1440_s0, 4  ;;  %s64_s28 = int_to_ptr.vmem [resolvable:$true] %s63_s28 }
   0xe   :  { %69 = dma.hbm_to_vmem [thread:$0]  %s62_s25, 1024, %s64_s28, [#allocation9], %s1436_s17, %s1436_s17, %s1437_s18  }
   0xf   :  { %1425 = dma.done.wait [#allocation3], 128  }
  0x10   :  { %1426 = vsyncadd [#allocation3], 4294967168 }
  0x11   :  { %1427 = dma.done.wait [#allocation6], 2048  }
  0x12   :  { %1428 = vsyncadd [#allocation6], 4294965248 }
  0x13   :  { %1429 = dma.done.wait [#allocation9], 1024  }
  0x14   :  { %1430 = vsyncadd [#allocation9], 4294966272  ;;  %v986_v0 = vld [vmem:[#allocation7] sm:$0xff]   ;;  %v1056_v1 = vld [vmem:[#allocation7 + $0x8] sm:$0xff]   ;;  %s910_s13 = sshll.u32 %s2267_s7, 4  ;;  %s1442_s14 = smov [#allocation11]   ;;  %s911_s13 = int_to_ptr.hbm [resolvable:$true] %s910_s13 }
  0x15   :  { %v987_v2 = vunpack.c.l.bf16 %v986_v0  ;;  %v988_v3 = vunpack.c.h.bf16 %v986_v0  ;;  %v1057_v4 = vld [vmem:[#allocation7 + $0x10] sm:$0xff]   ;;  %v991_v5 = vunpack.c.l.bf16 %v1056_v1  ;;  %v992_v6 = vunpack.c.h.bf16 %v1056_v1  ;;  %v1506_v7 = vld [vmem:[#allocation7 + $0x18] sm:$0xff]   ;;  %v1508_v9 = vld [vmem:[#allocation7 + $0x20] sm:$0xff]   ;;  %s919_s15 = sshll.u32 %s1442_s14, 4  ;;  %s921_s18 = sshll.u32 %s2268_s8, 4  ;;  %s920_s15 = int_to_ptr.vmem [resolvable:$true] %s919_s15  ;;  %s922_s18 = int_to_ptr.hbm [resolvable:$true] %s921_s18 }
  0x16   :  { %v995_v8 = vunpack.c.l.bf16 %v1057_v4  ;;  %v996_v10 = vunpack.c.h.bf16 %v1057_v4  ;;  %v1510_v11 = vld [vmem:[#allocation7 + $0x28] sm:$0xff]   ;;  %v999_v14 = vunpack.c.l.bf16 %v1506_v7  ;;  %v1513_v15 = vld [vmem:[#allocation7 + $0x30] sm:$0xff]   ;;  %v1000_v17 = vunpack.c.h.bf16 %v1506_v7  ;;  %v1517_v19 = vld [vmem:[#allocation7 + $0x38] sm:$0xff]   ;;  %s1443_s20 = smov [#allocation13]   ;;  %s932_s1 = sshll.u32 %s2269_s9, 4  ;;  %s933_s1 = int_to_ptr.hbm [resolvable:$true] %s932_s1 }
  0x17   :  { %v173_v12 = vand.u32 2147483647, %v987_v2  ;;  %v174_v13 = vand.u32 2147483647, %v988_v3  ;;  %v175_v16 = vand.u32 2147483647, %v991_v5  ;;  %v1003_v18 = vunpack.c.l.bf16 %v1508_v9 }
  0x18   :  { %v176_v20 = vand.u32 2147483647, %v992_v6  ;;  %v1004_v21 = vunpack.c.h.bf16 %v1508_v9  ;;  %v1007_v22 = vunpack.c.l.bf16 %v1510_v11  ;;  %v1008_v23 = vunpack.c.h.bf16 %v1510_v11  ;;  %s930_s21 = sshll.u32 %s1443_s20, 4  ;;  %s931_s21 = int_to_ptr.vmem [resolvable:$true] %s930_s21 }
  0x19   :  { %v177_v24 = vand.u32 2147483647, %v995_v8  ;;  %v1011_v25 = vunpack.c.l.bf16 %v1513_v15  ;;  %v178_v26 = vand.u32 2147483647, %v996_v10  ;;  %v189_v27 = vsub.f32 0.0, %v173_v12 }
  0x1a   :  { %v190_v28 = vsub.f32 0.0, %v174_v13  ;;  %v1012_v29 = vunpack.c.h.bf16 %v1513_v15  ;;  %v1015_v30 = vunpack.c.l.bf16 %v1517_v19  ;;  %v179_v31 = vand.u32 2147483647, %v999_v14 }
  0x1b   :  { %v191_v32 = vsub.f32 0.0, %v175_v16  ;;  %v1016_v33 = vunpack.c.h.bf16 %v1517_v19  ;;  %v1526_v34 = vmax.f32 %v987_v2, 0.0  ;;  %v180_v35 = vand.u32 2147483647, %v1000_v17 }
  0x1c   :  { %v192_v36 = vsub.f32 0.0, %v176_v20  ;;  %v1528_v37 = vmax.f32 %v988_v3, 0.0  ;;  %v181_v38 = vand.u32 2147483647, %v1003_v18  ;;  %v182_v39 = vand.u32 2147483647, %v1004_v21 }
  0x1d   :  { %v193_v40 = vsub.f32 0.0, %v177_v24  ;;  %v1530_v41 = vmax.f32 %v991_v5, 0.0  ;;  %v194_v42 = vsub.f32 0.0, %v178_v26  ;;  %v205_v43 = vmul.f32 1.442695, %v189_v27 }
  0x1e   :  { %v207_v44 = vmul.f32 1.442695, %v190_v28  ;;  %v1532_v45 = vmax.f32 %v992_v6, 0.0  ;;  %v183_v46 = vand.u32 2147483647, %v1007_v22  ;;  %v195_v47 = vsub.f32 0.0, %v179_v31 }
  0x1f   :  { %v209_v48 = vmul.f32 1.442695, %v191_v32  ;;  %v1536_v49 = vmax.f32 %v995_v8, 0.0  ;;  %v184_v50 = vand.u32 2147483647, %v1008_v23  ;;  %v196_v51 = vsub.f32 0.0, %v180_v35 }
  0x20   :  { %v211_v52 = vmul.f32 1.442695, %v192_v36  ;;  %v185_v53 = vand.u32 2147483647, %v1011_v25  ;;  %v197_v54 = vsub.f32 0.0, %v181_v38  ;;  %1087 = vpow2.f32 %v205_v43 }
  0x21   :  { %v213_v55 = vmul.f32 1.442695, %v193_v40  ;;  %v186_v56 = vand.u32 2147483647, %v1012_v29  ;;  %v198_v57 = vsub.f32 0.0, %v182_v39  ;;  %1089 = vpow2.f32 %v207_v44 }
  0x22   :  { %v215_v58 = vmul.f32 1.442695, %v194_v42  ;;  %v187_v59 = vand.u32 2147483647, %v1015_v30  ;;  %v199_v60 = vsub.f32 0.0, %v183_v46  ;;  %1091 = vpow2.f32 %v209_v48 }
  0x23   :  { %v217_v61 = vmul.f32 1.442695, %v195_v47  ;;  %v1546_v62 = vmax.f32 %v996_v10, 0.0  ;;  %v200_v63 = vsub.f32 0.0, %v184_v50  ;;  %1093 = vpow2.f32 %v211_v52 }
  0x24   :  { %v219_v0 = vmul.f32 1.442695, %v196_v51  ;;  %v1548_v1 = vmax.f32 %v999_v14, 0.0  ;;  %v201_v2 = vsub.f32 0.0, %v185_v53  ;;  %1095 = vpow2.f32 %v213_v55 }
  0x25   :  { %v221_v3 = vmul.f32 1.442695, %v197_v54  ;;  %v1550_v4 = vmax.f32 %v1000_v17, 0.0  ;;  %v202_v5 = vsub.f32 0.0, %v186_v56  ;;  %1097 = vpow2.f32 %v215_v58 }
  0x26   :  { %v223_v6 = vmul.f32 1.442695, %v198_v57  ;;  %v1088_v7 = vpop.eup %1087  ;;  %v1552_v8 = vmax.f32 %v1003_v18, 0.0  ;;  %v203_v9 = vsub.f32 0.0, %v187_v59  ;;  %1099 = vpow2.f32 %v217_v61 }
  0x27   :  { %v225_v10 = vmul.f32 1.442695, %v199_v60  ;;  %v1090_v12 = vpop.eup %1089  ;;  %v1554_v13 = vmax.f32 %v1004_v21, 0.0  ;;  %v188_v14 = vand.u32 2147483647, %v1016_v33  ;;  %1101 = vpow2.f32 %v219_v0 }
  0x28   :  { %v227_v16 = vmul.f32 1.442695, %v200_v63  ;;  %v1558_v20 = vpop.eup %1091  ;;  %v1562_v17 = vmax.f32 %v1007_v22, 0.0  ;;  %1103 = vpow2.f32 %v221_v3  ;;  %v229_v18 = vmul.f32 1.442695, %v201_v2 }
  0x29   :  { %v240_v24 = vmul.f32 -0.5, %v1088_v7  ;;  %v1564_v26 = vpop.eup %1093  ;;  %v1568_v21 = vmax.f32 %v1008_v23, 0.0  ;;  %v1572_v27 = vmax.f32 %v1011_v25, 0.0  ;;  %1105 = vpow2.f32 %v223_v6 }
  0x2a   :  { %v231_v28 = vmul.f32 1.442695, %v202_v5  ;;  %v1574_v31 = vpop.eup %1095  ;;  %v1578_v22 = vmax.f32 %v1012_v29, 0.0  ;;  %1107 = vpow2.f32 %v225_v10  ;;  %v233_v32 = vmul.f32 1.442695, %v203_v9 }
  0x2b   :  { %2270 = vst [vmem:[#allocation19_spill] sm:$0xff] %v1568_v21  ;;  %v249_v35 = vmul.f32 -0.5, %v1090_v12  ;;  %v1580_v36 = vpop.eup %1097  ;;  %v1584_v11 = vmax.f32 %v1015_v30, 0.0  ;;  %v204_v23 = vsub.f32 0.0, %v188_v14  ;;  %1109 = vpow2.f32 %v227_v16 }
  0x2c   :  { %2271 = vst [vmem:[#allocation20_spill] sm:$0xff] %v1572_v27  ;;  %v237_v25 = vadd.f32 1.0, %v1088_v7  ;;  %v1586_v38 = vpop.eup %1099  ;;  %1111 = vpow2.f32 %v229_v18  ;;  %v241_v39 = vadd.f32 1.0, %v240_v24  ;;  %v246_v40 = vadd.f32 1.0, %v1090_v12 }
  0x2d   :  { %2272 = vst [vmem:[#allocation21_spill] sm:$0xff] %v1578_v22  ;;  %v258_v15 = vmul.f32 -0.5, %v1558_v20  ;;  %v1589_v29 = vpop.eup %1101  ;;  %1113 = vpow2.f32 %v231_v28  ;;  %v243_v42 = vand.u32 2147483647, %v1088_v7  ;;  %v252_v43 = vand.u32 2147483647, %v1090_v12 }
  0x2e   :  { %2273 = vst [vmem:[#allocation22_spill] sm:$0xff] %v1584_v11  ;;  %v255_v44 = vadd.f32 1.0, %v1558_v20  ;;  %v1592_v46 = vpop.eup %1103  ;;  %1115 = vpow2.f32 %v233_v32  ;;  %v250_v30 = vadd.f32 1.0, %v249_v35  ;;  %v264_v47 = vadd.f32 1.0, %v1564_v26 }
  0x2f   :  { %v267_v48 = vmul.f32 -0.5, %v1564_v26  ;;  %v1596_v50 = vpop.eup %1105  ;;  %v1600_v51 = vmax.f32 %v1016_v33, 0.0  ;;  %v235_v52 = vmul.f32 1.442695, %v204_v23  ;;  %1117 = vlog2.f32 %v237_v25 }
  0x30   :  { %v261_v53 = vand.u32 2147483647, %v1558_v20  ;;  %v1603_v54 = vpop.eup %1107  ;;  %v1605_v55 = vmul.f32 %v1088_v7, %v241_v39  ;;  %1119 = vlog2.f32 %v246_v40  ;;  %v259_v56 = vadd.f32 1.0, %v258_v15 }
  0x31   :  { %2274 = vst [vmem:[#allocation23_spill] sm:$0xff] %v1600_v51  ;;  %v273_v57 = vadd.f32 1.0, %v1574_v31  ;;  %v1608_v58 = vpop.eup %1109  ;;  %1121 = vlog2.f32 %v255_v44  ;;  %v270_v59 = vand.u32 2147483647, %v1564_v26  ;;  %v276_v19 = vmul.f32 -0.5, %v1574_v31 }
  0x32   :  { %v282_v33 = vadd.f32 1.0, %v1580_v36  ;;  %v1613_v60 = vpop.eup %1111  ;;  %vm1615_vm0 = vcmp.lt.f32.partialorder %v243_v42, 0.0004427343  ;;  %v1619_v63 = vmul.f32 %v1090_v12, %v250_v30  ;;  %vm1621_vm1 = vcmp.lt.f32.partialorder %v252_v43, 0.0004427343  ;;  %v1064_v42 = vld [vmem:[#allocation8 + $0x10] sm:$0xff]  }
  0x33   :  { %1123 = vlog2.f32 %v264_v47  ;;  %v268_v2 = vadd.f32 1.0, %v267_v48  ;;  %v291_v3 = vadd.f32 1.0, %v1586_v38  ;;  %v1626_v5 = vpop.eup %1113  ;;  %vm1628_vm2 = vcmp.lt.f32.partialorder %v261_v53, 0.0004427343 }
  0x34   :  { %1125 = vpow2.f32 %v235_v52  ;;  %v279_v7 = vand.u32 2147483647, %v1574_v31  ;;  %v285_v9 = vmul.f32 -0.5, %v1580_v36  ;;  %v300_v10 = vadd.f32 1.0, %v1589_v29  ;;  %v1635_v12 = vpop.eup %1115 }
  0x35   :  { %1127 = vlog2.f32 %v273_v57  ;;  %v294_v14 = vmul.f32 -0.5, %v1586_v38  ;;  %v303_v16 = vmul.f32 -0.5, %v1589_v29  ;;  %v309_v18 = vadd.f32 1.0, %v1592_v46  ;;  %v1118_v24 = vpop.eup %1117 }
  0x36   :  { %v1641_v28 = vmul.f32 %v1558_v20, %v259_v56  ;;  %vm1643_vm3 = vcmp.lt.f32.partialorder %v270_v59, 0.0004427343  ;;  %v277_v35 = vadd.f32 1.0, %v276_v19  ;;  %1129 = vlog2.f32 %v282_v33  ;;  %v1120_v23 = vpop.eup %1119 }
  0x37   :  { %v1648_v25 = vmul.f32 %v1564_v26, %v268_v2  ;;  %v288_v39 = vand.u32 2147483647, %v1580_v36  ;;  %1131 = vlog2.f32 %v291_v3  ;;  %v312_v40 = vmul.f32 -0.5, %v1592_v46  ;;  %v1122_v15 = vpop.eup %1121 }
  0x38   :  { %vm1652_vm4 = vcmp.lt.f32.partialorder %v279_v7, 0.0004427343  ;;  %v286_v20 = vadd.f32 1.0, %v285_v9  ;;  %v297_v43 = vand.u32 2147483647, %v1586_v38  ;;  %1133 = vlog2.f32 %v300_v10 }
  0x39   :  { %v1124_v44 = vpop.eup %1123  ;;  %v295_v30 = vadd.f32 1.0, %v294_v14  ;;  %v304_v47 = vadd.f32 1.0, %v303_v16  ;;  %v306_v26 = vand.u32 2147483647, %v1589_v29  ;;  %1135 = vlog2.f32 %v309_v18 }
  0x3a   :  { %v1658_v48 = vpop.eup %1125  ;;  %v1660_v52 = vmul.f32 0.6931472, %v1118_v24  ;;  %v1662_v53 = vmul.f32 0.6931472, %v1120_v23  ;;  %v1665_v56 = vmul.f32 %v1574_v31, %v277_v35  ;;  %v315_v57 = vand.u32 2147483647, %v1592_v46 }
  0x3b   :  { %v1128_v59 = vpop.eup %1127  ;;  %v1668_v19 = vmul.f32 0.6931472, %v1122_v15  ;;  %vm1670_vm5 = vcmp.lt.f32.partialorder %v288_v39, 0.0004427343  ;;  %v313_v2 = vadd.f32 1.0, %v312_v40  ;;  %v318_v3 = vadd.f32 1.0, %v1596_v50 }
  0x3c   :  { %v1130_v7 = vpop.eup %1129  ;;  %v1675_v9 = vmul.f32 0.6931472, %v1124_v44  ;;  %v1678_v10 = vmul.f32 %v1580_v36, %v286_v20  ;;  %vm1680_vm6 = vcmp.lt.f32.partialorder %v297_v43, 0.0004427343  ;;  %v321_v14 = vmul.f32 -0.5, %v1596_v50 }
  0x3d   :  { %v1132_v16 = vpop.eup %1131  ;;  %v1686_v18 = vmul.f32 %v1586_v38, %v295_v30  ;;  %v1689_v24 = vmul.f32 %v1589_v29, %v304_v47  ;;  %vm1691_vm7 = vcmp.lt.f32.partialorder %v306_v26, 0.0004427343  ;;  %v327_v36 = vadd.f32 1.0, %v1603_v54 }
  0x3e   :  { %v1134_v23 = vpop.eup %1133  ;;  %v1704_v40 = vmul.f32 0.6931472, %v1128_v59  ;;  %vm1706_vm8 = vcmp.lt.f32.partialorder %v315_v57, 0.0004427343  ;;  %v1715_v43 = vmul.f32 %v1592_v46, %v313_v2  ;;  %1137 = vlog2.f32 %v318_v3 }
  0x3f   :  { %v1136_v15 = vpop.eup %1135  ;;  %v324_v44 = vand.u32 2147483647, %v1596_v50  ;;  %v1722_v47 = vmul.f32 0.6931472, %v1130_v7  ;;  %v322_v26 = vadd.f32 1.0, %v321_v14  ;;  %v336_v57 = vadd.f32 1.0, %v1608_v58 }
  0x40   :  { %v1725_v59 = vmul.f32 0.6931472, %v1132_v16  ;;  %1139 = vlog2.f32 %v327_v36  ;;  %v330_v20 = vmul.f32 -0.5, %v1603_v54  ;;  %v345_v46 = vadd.f32 1.0, %v1613_v60 }
  0x41   :  { %v1733_v3 = vmul.f32 0.6931472, %v1134_v23  ;;  %v1735_v30 = vmul.f32 0.6931472, %v1136_v15  ;;  %1141 = vlog2.f32 %v336_v57  ;;  %v333_v7 = vand.u32 2147483647, %v1603_v54 }
  0x42   :  { %v339_v14 = vmul.f32 -0.5, %v1608_v58  ;;  %1143 = vlog2.f32 %v345_v46  ;;  %v354_v16 = vadd.f32 1.0, %v1626_v5  ;;  %v290_v36 = vsel %vm1670_vm5, %v1678_v10, %v1722_v47 }
  0x43   :  { %v1745_v38 = vmul.f32 %v1596_v50, %v322_v26  ;;  %vm1747_vm9 = vcmp.lt.f32.partialorder %v324_v44, 0.0004427343  ;;  %v348_v15 = vmul.f32 -0.5, %v1613_v60  ;;  %v299_v46 = vsel %vm1680_vm6, %v1686_v18, %v1725_v59 }
  0x44   :  { %v1138_v57 = vpop.eup %1137  ;;  %v331_v2 = vadd.f32 1.0, %v330_v20  ;;  %1145 = vlog2.f32 %v354_v16  ;;  %v357_v33 = vmul.f32 -0.5, %v1626_v5  ;;  %v308_v50 = vsel %vm1691_vm7, %v1689_v24, %v1733_v3 }
  0x45   :  { %v342_v10 = vand.u32 2147483647, %v1608_v58  ;;  %v363_v44 = vadd.f32 1.0, %v1635_v12  ;;  %v366_v47 = vmul.f32 -0.5, %v1635_v12  ;;  %v317_v31 = vsel %vm1706_vm8, %v1715_v43, %v1735_v30 }
  0x46   :  { %v1140_v26 = vpop.eup %1139  ;;  %vm1768_vm10 = vcmp.lt.f32.partialorder %v333_v7, 0.0004427343  ;;  %v340_v20 = vadd.f32 1.0, %v339_v14  ;;  %v372_v35 = vadd.f32 1.0, %v1658_v48  ;;  %v320_v59 = vmul.f32 0.6931472, %v1138_v57 }
  0x47   :  { %v1142_v24 = vpop.eup %1141  ;;  %v349_v3 = vadd.f32 1.0, %v348_v15  ;;  %1147 = vlog2.f32 %v363_v44  ;;  %v375_v16 = vmul.f32 -0.5, %v1658_v48  ;;  %v351_v51 = vand.u32 2147483647, %v1613_v60 }
  0x48   :  { %v1144_v39 = vpop.eup %1143  ;;  %v358_v11 = vadd.f32 1.0, %v357_v33  ;;  %v360_v29 = vand.u32 2147483647, %v1626_v5  ;;  %1149 = vlog2.f32 %v372_v35  ;;  %v329_v43 = vmul.f32 0.6931472, %v1140_v26 }
  0x49   :  { %v332_v30 = vmul.f32 %v1603_v54, %v331_v2  ;;  %v367_v7 = vadd.f32 1.0, %v366_v47  ;;  %v369_v14 = vand.u32 2147483647, %v1635_v12  ;;  %v338_v27 = vmul.f32 0.6931472, %v1142_v24 }
  0x4a   :  { %v1146_v22 = vpop.eup %1145  ;;  %v341_v15 = vmul.f32 %v1608_v58, %v340_v20  ;;  %v376_v57 = vadd.f32 1.0, %v375_v16  ;;  %v378_v44 = vand.u32 2147483647, %v1658_v48  ;;  %v326_v33 = vsel %vm1747_vm9, %v1745_v38, %v320_v59  ;;  %v1068_v16 = vld [vmem:[#allocation8 + $0x30] sm:$0xff]  }
  0x4b   :  { %vm1783_vm11 = vcmp.lt.f32.partialorder %v342_v10, 0.0004427343  ;;  %v347_v26 = vmul.f32 0.6931472, %v1144_v39  ;;  %v350_v54 = vmul.f32 %v1613_v60, %v349_v3  ;;  %vm1788_vm12 = vcmp.lt.f32.partialorder %v351_v51, 0.0004427343 }
  0x4c   :  { %v356_v47 = vmul.f32 0.6931472, %v1146_v22  ;;  %v359_v58 = vmul.f32 %v1626_v5, %v358_v11  ;;  %vm1793_vm13 = vcmp.lt.f32.partialorder %v360_v29, 0.0004427343  ;;  %v335_v38 = vsel %vm1768_vm10, %v332_v30, %v329_v43  ;;  %v1069_v29 = vld [vmem:[#allocation8 + $0x38] sm:$0xff]   ;;  %v2315_v43 = vld [vmem:[#allocation22_spill] sm:$0xff] }
  0x4d   :  { %v1148_v23 = vpop.eup %1147  ;;  %v368_v10 = vmul.f32 %v1635_v12, %v367_v7  ;;  %vm1800_vm14 = vcmp.lt.f32.partialorder %v369_v14, 0.0004427343  ;;  %v2305_v22 = vsel %vm1615_vm0, %v1605_v55, %v1660_v52  ;;  %v344_v60 = vsel %vm1783_vm11, %v341_v15, %v338_v27  ;;  %v2316_v7 = vld [vmem:[#allocation23_spill] sm:$0xff] }
  0x4e   :  { %v1810_v11 = vadd.f32 %v2305_v22, %v1526_v34  ;;  %v1150_v51 = vpop.eup %1149  ;;  %v365_v5 = vmul.f32 0.6931472, %v1148_v23  ;;  %v377_v18 = vmul.f32 %v1658_v48, %v376_v57  ;;  %vm1815_vm15 = vcmp.lt.f32.partialorder %v378_v44, 0.0004427343 }
  0x4f   :  { %v353_v35 = vsel %vm1788_vm12, %v350_v54, %v347_v26  ;;  %v374_v61 = vmul.f32 0.6931472, %v1150_v51  ;;  %v2308_v34 = vsel %vm1621_vm1, %v1619_v63, %v1662_v53  ;;  %v2309_v21 = vsel %vm1628_vm2, %v1641_v28, %v1668_v19  ;;  %v1065_v19 = vld [vmem:[#allocation8 + $0x18] sm:$0xff]  }
  0x50   :  { %v382_v55 = vadd.f32 %v2308_v34, %v1528_v37  ;;  %v383_v27 = vadd.f32 %v2309_v21, %v1530_v41  ;;  %v362_v48 = vsel %vm1793_vm13, %v359_v58, %v356_v47  ;;  %v2310_v0 = vsel %vm1643_vm3, %v1648_v25, %v1675_v9  ;;  %v1018_v41 = vld [vmem:[#allocation8] sm:$0xff]   ;;  %v1063_v25 = vld [vmem:[#allocation8 + $0x8] sm:$0xff]  }
  0x51   :  { %v384_v52 = vadd.f32 %v2310_v0, %v1532_v45  ;;  %v2311_v37 = vsel %vm1652_vm4, %v1665_v56, %v1704_v40  ;;  %v386_v6 = vadd.f32 %v290_v36, %v1546_v62  ;;  %v387_v28 = vadd.f32 %v299_v46, %v1548_v1  ;;  %v2312_v1 = vld [vmem:[#allocation19_spill] sm:$0xff] }
  0x52   :  { %v385_v63 = vadd.f32 %v2311_v37, %v1536_v49  ;;  %v1850_v53 = vadd.f32 %v308_v50, %v1550_v4  ;;  %v1853_v32 = vadd.f32 %v317_v31, %v1552_v8  ;;  %v1856_v45 = vadd.f32 %v326_v33, %v1554_v13  ;;  %v2313_v8 = vld [vmem:[#allocation20_spill] sm:$0xff]  ;;  %v2314_v13 = vld [vmem:[#allocation21_spill] sm:$0xff] }
  0x53   :  { %v371_v56 = vsel %vm1800_vm14, %v368_v10, %v365_v5  ;;  %v380_v49 = vsel %vm1815_vm15, %v377_v18, %v374_v61  ;;  %v1863_v62 = vadd.f32 %v335_v38, %v1562_v17  ;;  %v1866_v4 = vadd.f32 %v344_v60, %v2312_v1  ;;  %v1066_v50 = vld [vmem:[#allocation8 + $0x20] sm:$0xff]   ;;  %v1067_v31 = vld [vmem:[#allocation8 + $0x28] sm:$0xff]  }
  0x54   :  { %v1869_v9 = vadd.f32 %v353_v35, %v2313_v8  ;;  %v1872_v40 = vadd.f32 %v362_v48, %v2314_v13  ;;  %v1874_v36 = vunpack.c.l.bf16 %v1018_v41  ;;  %v1876_v46 = vunpack.c.h.bf16 %v1018_v41 }
  0x55   :  { %v1878_v24 = vunpack.c.l.bf16 %v1063_v25  ;;  %v1880_v17 = vunpack.c.h.bf16 %v1063_v25  ;;  %v1882_v59 = vunpack.c.l.bf16 %v1064_v42  ;;  %v1884_v3 = vunpack.c.h.bf16 %v1064_v42 }
  0x56   :  { %v1887_v30 = vadd.f32 %v371_v56, %v2315_v43  ;;  %v1890_v14 = vadd.f32 %v380_v49, %v2316_v7  ;;  %v1892_v15 = vunpack.c.l.bf16 %v1065_v19  ;;  %v1894_v57 = vunpack.c.h.bf16 %v1065_v19 }
  0x57   :  { %v1896_v44 = vunpack.c.l.bf16 %v1066_v50  ;;  %v1898_v33 = vunpack.c.h.bf16 %v1066_v50  ;;  %v1900_v26 = vunpack.c.l.bf16 %v1067_v31  ;;  %v1902_v54 = vunpack.c.h.bf16 %v1067_v31 }
  0x58   :  { %v1904_v2 = vunpack.c.l.bf16 %v1068_v16  ;;  %v1906_v47 = vunpack.c.h.bf16 %v1068_v16  ;;  %v1908_v58 = vunpack.c.l.bf16 %v1069_v29  ;;  %v1910_v20 = vunpack.c.h.bf16 %v1069_v29 }
  0x59   :  { %v1913_v23 = vmul.f32 %v1876_v46, %v382_v55  ;;  %v1916_v38 = vmul.f32 %v1878_v24, %v383_v27  ;;  %v1919_v10 = vmul.f32 %v1880_v17, %v384_v52  ;;  %1151 = vlog2.f32 %v1810_v11 }
  0x5a   :  { %v1923_v39 = vmul.f32 %v1882_v59, %v385_v63  ;;  %v1926_v22 = vmul.f32 %v1884_v3, %v386_v6  ;;  %v1929_v51 = vmul.f32 %v1892_v15, %v387_v28  ;;  %1153 = vlog2.f32 %v382_v55 }
  0x5b   :  { %v1933_v60 = vmul.f32 %v1894_v57, %v1850_v53  ;;  %v1937_v5 = vmul.f32 %v1896_v44, %v1853_v32  ;;  %v1941_v18 = vmul.f32 %v1898_v33, %v1856_v45  ;;  %1155 = vlog2.f32 %v383_v27 }
  0x5c   :  { %v1945_v12 = vmul.f32 %v1900_v26, %v1863_v62  ;;  %v1949_v35 = vmul.f32 %v1902_v54, %v1866_v4  ;;  %v1953_v61 = vmul.f32 %v1904_v2, %v1869_v9  ;;  %1157 = vlog2.f32 %v384_v52 }
  0x5d   :  { %2317 = vst [vmem:[#allocation19_spill] sm:$0xff] %v1941_v18  ;;  %v1957_v34 = vmul.f32 %v1906_v47, %v1872_v40  ;;  %v1961_v55 = vmul.f32 %v1908_v58, %v1887_v30  ;;  %v1965_v21 = vmul.f32 %v1910_v20, %v1890_v14  ;;  %1159 = vlog2.f32 %v385_v63 }
  0x5e   :  { %2318 = vst [vmem:[#allocation20_spill] sm:$0xff] %v1945_v12  ;;  %1161 = vlog2.f32 %v386_v6  ;;  %v528_v27 = vmul.f32 0.5, %v1874_v36  ;;  %v529_v48 = vmul.f32 0.5, %v1876_v46  ;;  %v530_v0 = vmul.f32 0.5, %v1878_v24 }
  0x5f   :  { %2319 = vst [vmem:[#allocation21_spill] sm:$0xff] %v1949_v35  ;;  %v1152_v52 = vpop.eup %1151  ;;  %1163 = vlog2.f32 %v387_v28  ;;  %v531_v37 = vmul.f32 0.5, %v1880_v17  ;;  %v532_v41 = vmul.f32 0.5, %v1882_v59  ;;  %v533_v25 = vmul.f32 0.5, %v1884_v3 }
  0x60   :  { %2320 = vst [vmem:[#allocation22_spill] sm:$0xff] %v1953_v61  ;;  %v1154_v42 = vpop.eup %1153  ;;  %1165 = vlog2.f32 %v1850_v53  ;;  %v534_v63 = vmul.f32 0.5, %v1892_v15  ;;  %v535_v6 = vmul.f32 0.5, %v1894_v57  ;;  %v536_v56 = vmul.f32 0.5, %v1896_v44 }
  0x61   :  { %2321 = vst [vmem:[#allocation23_spill] sm:$0xff] %v1957_v34  ;;  %v1156_v49 = vpop.eup %1155  ;;  %1167 = vlog2.f32 %v1853_v32  ;;  %v537_v28 = vmul.f32 0.5, %v1898_v33  ;;  %v538_v1 = vmul.f32 0.5, %v1900_v26  ;;  %v539_v19 = vmul.f32 0.5, %v1902_v54 }
  0x62   :  { %v1158_v8 = vpop.eup %1157  ;;  %v481_v13 = vmul.f32 0.6931472, %v1152_v52  ;;  %v483_v50 = vmul.f32 0.6931472, %v1154_v42  ;;  %1169 = vlog2.f32 %v1856_v45  ;;  %v540_v53 = vmul.f32 0.5, %v1904_v2 }
  0x63   :  { %v1160_v31 = vpop.eup %1159  ;;  %1171 = vlog2.f32 %v1863_v62  ;;  %v541_v16 = vmul.f32 0.5, %v1906_v47  ;;  %v1986_v32 = vmul.f32 0.5, %v1908_v58  ;;  %v1989_v29 = vmul.f32 0.5, %v1910_v20 }
  0x64   :  { %v1162_v43 = vpop.eup %1161  ;;  %v485_v7 = vmul.f32 0.6931472, %v1156_v49  ;;  %1173 = vlog2.f32 %v1866_v4  ;;  %v544_v52 = vmul.f32 %v1874_v36, %v528_v27  ;;  %v545_v45 = vmul.f32 %v1876_v46, %v529_v48 }
  0x65   :  { %v1164_v42 = vpop.eup %1163  ;;  %1175 = vlog2.f32 %v1869_v9  ;;  %v546_v62 = vmul.f32 %v1878_v24, %v530_v0  ;;  %v547_v34 = vmul.f32 %v1880_v17, %v531_v37  ;;  %v548_v61 = vmul.f32 %v1882_v59, %v532_v41 }
  0x66   :  { %v1166_v35 = vpop.eup %1165  ;;  %v487_v12 = vmul.f32 0.6931472, %v1158_v8  ;;  %1177 = vlog2.f32 %v1872_v40  ;;  %v512_v49 = vsub.f32 -0.9189385, %v481_v13  ;;  %v513_v18 = vsub.f32 -0.9189385, %v483_v50 }
  0x67   :  { %v1168_v4 = vpop.eup %1167  ;;  %1179 = vlog2.f32 %v1887_v30  ;;  %v549_v46 = vmul.f32 %v1884_v3, %v533_v25  ;;  %v550_v27 = vmul.f32 %v1892_v15, %v534_v63  ;;  %v551_v9 = vmul.f32 %v1894_v57, %v535_v6 }
  0x68   :  { %v1170_v24 = vpop.eup %1169  ;;  %v489_v48 = vmul.f32 0.6931472, %v1160_v31  ;;  %1181 = vlog2.f32 %v1890_v14  ;;  %v514_v17 = vsub.f32 -0.9189385, %v485_v7  ;;  %v552_v59 = vmul.f32 %v1896_v44, %v536_v56 }
  0x69   :  { %v1172_v0 = vpop.eup %1171  ;;  %v491_v40 = vmul.f32 0.6931472, %v1162_v43  ;;  %v493_v37 = vmul.f32 0.6931472, %v1164_v42  ;;  %v553_v41 = vmul.f32 %v1898_v33, %v537_v28  ;;  %v554_v30 = vmul.f32 %v1900_v26, %v538_v1 }
  0x6a   :  { %v1174_v8 = vpop.eup %1173  ;;  %v495_v3 = vmul.f32 0.6931472, %v1166_v35  ;;  %v515_v25 = vsub.f32 -0.9189385, %v487_v12  ;;  %v560_v15 = vsub.f32 %v512_v49, %v544_v52  ;;  %v561_v63 = vsub.f32 %v513_v18, %v545_v45 }
  0x6b   :  { %v1176_v57 = vpop.eup %1175  ;;  %v497_v6 = vmul.f32 0.6931472, %v1168_v4  ;;  %v499_v13 = vmul.f32 0.6931472, %v1170_v24  ;;  %v501_v50 = vmul.f32 0.6931472, %v1172_v0  ;;  %v555_v14 = vmul.f32 %v1902_v54, %v539_v19 }
  0x6c   :  { %v1178_v31 = vpop.eup %1177  ;;  %v503_v44 = vmul.f32 0.6931472, %v1174_v8  ;;  %v505_v56 = vmul.f32 0.6931472, %v1176_v57  ;;  %v516_v43 = vsub.f32 -0.9189385, %v489_v48  ;;  %v562_v7 = vsub.f32 %v514_v17, %v546_v62 }
  0x6d   :  { %v1180_v42 = vpop.eup %1179  ;;  %v507_v33 = vmul.f32 0.6931472, %v1178_v31  ;;  %v517_v28 = vsub.f32 -0.9189385, %v491_v40  ;;  %v518_v26 = vsub.f32 -0.9189385, %v493_v37  ;;  %v556_v35 = vmul.f32 %v1904_v2, %v540_v53 }
  0x6e   :  { %v1182_v12 = vpop.eup %1181  ;;  %v509_v1 = vmul.f32 0.6931472, %v1180_v42  ;;  %v519_v18 = vsub.f32 -0.9189385, %v495_v3  ;;  %v563_v52 = vsub.f32 %v515_v25, %v547_v34  ;;  %v839_v45 = vadd.f32 %v561_v63, %v560_v15  ;;  %v954_v25 = vld [vmem:[#allocation5] sm:$0xff]   ;;  %v1049_v63 = vld [vmem:[#allocation5 + $0x8] sm:$0xff]  }
  0x6f   :  { %v520_v49 = vsub.f32 -0.9189385, %v497_v6  ;;  %v521_v4 = vsub.f32 -0.9189385, %v499_v13  ;;  %v522_v24 = vsub.f32 -0.9189385, %v501_v50  ;;  %v557_v54 = vmul.f32 %v1906_v47, %v541_v16 }
  0x70   :  { %v523_v19 = vsub.f32 -0.9189385, %v503_v44  ;;  %v524_v0 = vsub.f32 -0.9189385, %v505_v56  ;;  %v564_v48 = vsub.f32 %v516_v43, %v548_v61  ;;  %v840_v62 = vadd.f32 %v839_v45, %v562_v7  ;;  %v1053_v31 = vld [vmem:[#allocation5 + $0x28] sm:$0xff]   ;;  %v1054_v44 = vld [vmem:[#allocation5 + $0x30] sm:$0xff]  }
  0x71   :  { %v2010_v17 = vmul.f32 0.6931472, %v1182_v12  ;;  %v525_v40 = vsub.f32 -0.9189385, %v507_v33  ;;  %v558_v2 = vmul.f32 %v1908_v58, %v1986_v32  ;;  %v2016_v53 = vmul.f32 %v1910_v20, %v1989_v29  ;;  %v1050_v20 = vld [vmem:[#allocation5 + $0x10] sm:$0xff]   ;;  %v1051_v32 = vld [vmem:[#allocation5 + $0x18] sm:$0xff]  }
  0x72   :  { %v526_v34 = vsub.f32 -0.9189385, %v509_v1  ;;  %v565_v37 = vsub.f32 %v517_v28, %v549_v46  ;;  %v566_v8 = vsub.f32 %v518_v26, %v550_v27  ;;  %v841_v3 = vadd.f32 %v840_v62, %v563_v52 }
  0x73   :  { %v567_v47 = vsub.f32 %v519_v18, %v551_v9  ;;  %v568_v16 = vsub.f32 %v520_v49, %v552_v59  ;;  %v569_v15 = vsub.f32 %v521_v4, %v553_v41  ;;  %v570_v61 = vsub.f32 %v522_v24, %v554_v30  ;;  %v1052_v59 = vld [vmem:[#allocation5 + $0x20] sm:$0xff]   ;;  %v1055_v41 = vld [vmem:[#allocation5 + $0x38] sm:$0xff]  }
  0x74   :  { %v2018_v57 = vsub.f32 %v523_v19, %v555_v14  ;;  %v2020_v6 = vsub.f32 %v524_v0, %v556_v35  ;;  %v842_v13 = vadd.f32 %v841_v3, %v564_v48  ;;  %v446_v58 = vmul.f32 %v1874_v36, %v1810_v11 }
  0x75   :  { %v527_v29 = vsub.f32 -0.9189385, %v2010_v17  ;;  %v2025_v46 = vsub.f32 %v525_v40, %v557_v54  ;;  %v955_v27 = vunpack.c.l.bf16 %v954_v25  ;;  %v956_v9 = vunpack.c.h.bf16 %v954_v25  ;;  %v2326_v25 = vld [vmem:[#allocation23_spill] sm:$0xff] }
  0x76   :  { %v2027_v30 = vsub.f32 %v526_v34, %v558_v2  ;;  %v843_v50 = vadd.f32 %v842_v13, %v565_v37  ;;  %v959_v14 = vunpack.c.l.bf16 %v1049_v63  ;;  %v984_v56 = vunpack.c.h.bf16 %v1055_v41  ;;  %v2323_v2 = vld [vmem:[#allocation20_spill] sm:$0xff]  ;;  %v2324_v37 = vld [vmem:[#allocation21_spill] sm:$0xff] }
  0x77   :  { %v960_v43 = vunpack.c.h.bf16 %v1049_v63  ;;  %v963_v7 = vunpack.c.l.bf16 %v1050_v20  ;;  %v964_v11 = vunpack.c.h.bf16 %v1050_v20  ;;  %v967_v36 = vunpack.c.l.bf16 %v1051_v32 }
  0x78   :  { %v844_v42 = vadd.f32 %v843_v50, %v566_v8  ;;  %v968_v33 = vunpack.c.h.bf16 %v1051_v32  ;;  %v971_v28 = vunpack.c.l.bf16 %v1052_v59  ;;  %v983_v26 = vunpack.c.l.bf16 %v1055_v41 }
  0x79   :  { %v972_v35 = vunpack.c.h.bf16 %v1052_v59  ;;  %v975_v12 = vunpack.c.l.bf16 %v1053_v31  ;;  %v976_v1 = vunpack.c.h.bf16 %v1053_v31  ;;  %v979_v18 = vunpack.c.l.bf16 %v1054_v44 }
  0x7a   :  { %v845_v52 = vadd.f32 %v844_v42, %v567_v47  ;;  %v980_v45 = vunpack.c.h.bf16 %v1054_v44  ;;  %v2029_v49 = vadd.f32 %v955_v27, %v446_v58  ;;  %v477_v4 = vadd.f32 %v984_v56, %v1965_v21 }
  0x7b   :  { %v2033_v24 = vadd.f32 %v956_v9, %v1913_v23  ;;  %v2036_v54 = vadd.f32 %v959_v14, %v1916_v38  ;;  %v2039_v19 = vadd.f32 %v960_v43, %v1919_v10  ;;  %v2042_v0 = vadd.f32 %v963_v7, %v1923_v39  ;;  %v2322_v10 = vld [vmem:[#allocation19_spill] sm:$0xff] }
  0x7c   :  { %v846_v48 = vadd.f32 %v845_v52, %v568_v16  ;;  %v2045_v62 = vadd.f32 %v964_v11, %v1926_v22  ;;  %v2048_v17 = vadd.f32 %v967_v36, %v1929_v51  ;;  %v476_v21 = vadd.f32 %v983_v26, %v1961_v55  ;;  %882 = vmatpush.msra.mxu0 %v477_v4  ;;  %v2325_v22 = vld [vmem:[#allocation22_spill] sm:$0xff] }
  0x7d   :  { %v2052_v23 = vadd.f32 %v968_v33, %v1933_v60  ;;  %v470_v38 = vadd.f32 %v971_v28, %v1937_v5  ;;  %v471_v40 = vadd.f32 %v972_v35, %v2322_v10  ;;  %v472_v39 = vadd.f32 %v975_v12, %v2323_v2 }
  0x7e   :  { %v847_v34 = vadd.f32 %v846_v48, %v569_v15  ;;  %v473_v8 = vadd.f32 %v976_v1, %v2324_v37  ;;  %v474_v3 = vadd.f32 %v979_v18, %v2325_v22  ;;  %v475_v51 = vadd.f32 %v980_v45, %v2326_v25  ;;  %883 = vmatpush.msra.mxu0 %v476_v21 }
  0x7f   :  { %v575_v55 = vsub.f32 %v527_v29, %v2016_v53  ;;  %v582_v60 = vmul.f32 %v2029_v49, %v2029_v49  ;;  %v583_v5 = vmul.f32 %v2033_v24, %v2033_v24  ;;  %v584_v47 = vmul.f32 %v2036_v54, %v2036_v54 }
  0x80   :  { %v848_v16 = vadd.f32 %v847_v34, %v570_v61  ;;  %v585_v15 = vmul.f32 %v2039_v19, %v2039_v19  ;;  %v586_v63 = vmul.f32 %v2042_v0, %v2042_v0  ;;  %v587_v13 = vmul.f32 %v2045_v62, %v2045_v62  ;;  %884 = vmatpush.msra.mxu0 %v475_v51 }
  0x81   :  { %v588_v53 = vmul.f32 %v2048_v17, %v2048_v17  ;;  %v589_v58 = vmul.f32 %v2052_v23, %v2052_v23  ;;  %v2077_v20 = vmul.f32 %v470_v38, %v470_v38  ;;  %v2079_v32 = vmul.f32 %v471_v40, %v471_v40 }
  0x82   :  { %v849_v61 = vadd.f32 %v848_v16, %v2018_v57  ;;  %v2082_v29 = vmul.f32 %v472_v39, %v472_v39  ;;  %v2084_v27 = vmul.f32 %v473_v8, %v473_v8  ;;  %v2086_v9 = vmul.f32 %v474_v3, %v474_v3  ;;  %885 = vmatpush.msra.mxu0 %v474_v3 }
  0x83   :  { %v2088_v59 = vmul.f32 %v475_v51, %v475_v51  ;;  %v2090_v41 = vmul.f32 %v476_v21, %v476_v21  ;;  %v2092_v50 = vmul.f32 %v477_v4, %v477_v4  ;;  %v2094_v14 = vmul.f32 0.5, %v582_v60 }
  0x84   :  { %v850_v31 = vadd.f32 %v849_v61, %v2020_v6  ;;  %v2097_v44 = vmul.f32 0.5, %v583_v5  ;;  %v2099_v57 = vmul.f32 0.5, %v584_v47  ;;  %v2101_v56 = vmul.f32 0.5, %v585_v15  ;;  %886 = vmatpush.msra.mxu0 %v473_v8 }
  0x85   :  { %v2103_v43 = vmul.f32 0.5, %v586_v63  ;;  %v2105_v7 = vmul.f32 0.5, %v587_v13  ;;  %v2107_v11 = vmul.f32 0.5, %v588_v53  ;;  %v2109_v36 = vmul.f32 0.5, %v589_v58 }
  0x86   :  { %v851_v42 = vadd.f32 %v850_v31, %v2025_v46  ;;  %v2113_v33 = vmul.f32 0.5, %v2077_v20  ;;  %v2116_v6 = vmul.f32 0.5, %v2079_v32  ;;  %v2119_v28 = vmul.f32 0.5, %v2082_v29  ;;  %887 = vmatpush.msra.mxu0 %v472_v39 }
  0x87   :  { %v2122_v26 = vmul.f32 0.5, %v2084_v27  ;;  %v2125_v35 = vmul.f32 0.5, %v2086_v9  ;;  %v2128_v12 = vmul.f32 0.5, %v2088_v59  ;;  %v2131_v46 = vmul.f32 0.5, %v2090_v41 }
  0x88   :  { %v852_v1 = vadd.f32 %v851_v42, %v2027_v30  ;;  %v2135_v18 = vmul.f32 0.5, %v2092_v50  ;;  %v614_v52 = vsub.f32 -0.9189385, %v2094_v14  ;;  %v615_v45 = vsub.f32 -0.9189385, %v2097_v44  ;;  %888 = vmatpush.msra.mxu0 %v471_v40 }
  0x89   :  { %v616_v4 = vsub.f32 -0.9189385, %v2099_v57  ;;  %v617_v48 = vsub.f32 -0.9189385, %v2101_v56  ;;  %v618_v21 = vsub.f32 -0.9189385, %v2103_v43 }
  0x8a   :  { %v853_v10 = vadd.f32 %v852_v1, %v575_v55  ;;  %v619_v2 = vsub.f32 -0.9189385, %v2105_v7  ;;  %v620_v39 = vsub.f32 -0.9189385, %v2107_v11  ;;  %v621_v30 = vsub.f32 -0.9189385, %v2109_v36  ;;  %889 = vmatpush.msra.mxu0 %v470_v38 }
  0x8b   :  { %v630_v34 = vmul.f32 81377.4, %v582_v60  ;;  %v631_v37 = vmul.f32 81377.4, %v583_v5  ;;  %v632_v8 = vmul.f32 81377.4, %v584_v47 }
  0x8c   :  { %854 = vadd.xlane.f32.xlu1 %v853_v10  ;;  %v622_v40 = vsub.f32 -0.9189385, %v2113_v33  ;;  %v623_v22 = vsub.f32 -0.9189385, %v2116_v6  ;;  %v633_v3 = vmul.f32 81377.4, %v585_v15  ;;  %890 = vmatpush.msra.mxu0 %v2052_v23 }
  0x8d   :  { %v624_v25 = vsub.f32 -0.9189385, %v2119_v28  ;;  %v625_v51 = vsub.f32 -0.9189385, %v2122_v26  ;;  %v634_v55 = vmul.f32 81377.4, %v586_v63 }
  0x8e   :  { %v626_v16 = vsub.f32 -0.9189385, %v2125_v35  ;;  %v635_v61 = vmul.f32 81377.4, %v587_v13  ;;  %v636_v38 = vmul.f32 81377.4, %v588_v53  ;;  %891 = vmatpush.msra.mxu0 %v2048_v17 }
  0x8f   :  { %v646_v60 = vsub.f32 5.0810614, %v630_v34  ;;  %v647_v5 = vsub.f32 5.0810614, %v631_v37  ;;  %v648_v47 = vsub.f32 5.0810614, %v632_v8 }
  0x90   :  { %v627_v31 = vsub.f32 -0.9189385, %v2128_v12  ;;  %v637_v42 = vmul.f32 81377.4, %v589_v58  ;;  %v649_v15 = vsub.f32 5.0810614, %v633_v3  ;;  %892 = vmatpush.msra.mxu0 %v2045_v62 }
  0x91   :  { %v628_v23 = vsub.f32 -0.9189385, %v2131_v46  ;;  %v638_v1 = vmul.f32 81377.4, %v2077_v20  ;;  %v650_v63 = vsub.f32 5.0810614, %v634_v55  ;;  %v662_v34 = vsub.f32 %v646_v60, %v614_v52 }
  0x92   :  { %v639_v10 = vmul.f32 81377.4, %v2079_v32  ;;  %v640_v13 = vmul.f32 81377.4, %v2082_v29  ;;  %v651_v53 = vsub.f32 5.0810614, %v635_v61  ;;  %893 = vmatpush.msra.mxu0 %v2042_v0  ;;  %v663_v58 = vsub.f32 %v647_v5, %v615_v45 }
  0x93   :  { %v652_v17 = vsub.f32 5.0810614, %v636_v38  ;;  %v664_v62 = vsub.f32 %v648_v47, %v616_v4  ;;  %v629_v20 = vsub.f32 -0.9189385, %v2135_v18  ;;  %v641_v37 = vmul.f32 81377.4, %v2084_v27 }
  0x94   :  { %v653_v32 = vsub.f32 5.0810614, %v637_v42  ;;  %v665_v29 = vsub.f32 %v649_v15, %v617_v48  ;;  %894 = vmatpush.msra.mxu0 %v2039_v19  ;;  %v642_v0 = vmul.f32 81377.4, %v2086_v9  ;;  %v643_v8 = vmul.f32 81377.4, %v2088_v59 }
  0x95   :  { %v654_v3 = vsub.f32 5.0810614, %v638_v1  ;;  %v666_v55 = vsub.f32 %v650_v63, %v618_v21  ;;  %v644_v61 = vmul.f32 81377.4, %v2090_v41  ;;  %v655_v38 = vsub.f32 5.0810614, %v639_v10 }
  0x96   :  { %v656_v60 = vsub.f32 5.0810614, %v640_v13  ;;  %v667_v27 = vsub.f32 %v651_v53, %v619_v2  ;;  %895 = vmatpush.msra.mxu0 %v2036_v54  ;;  %v668_v19 = vsub.f32 %v652_v17, %v620_v39  ;;  %v678_v5 = vmul.f32 1.442695, %v662_v34  ;;  %v445_v35 = vld [vmem:[%s2266_s6] sm:$0x1] }
  0x97   :  { %v680_v9 = vmul.f32 1.442695, %v663_v58  ;;  %v682_v47 = vmul.f32 1.442695, %v664_v62  ;;  %v645_v59 = vmul.f32 81377.4, %v2092_v50  ;;  %v669_v15 = vsub.f32 %v653_v32, %v621_v30 }
  0x98   :  { %v657_v42 = vsub.f32 5.0810614, %v641_v37  ;;  %v684_v41 = vmul.f32 1.442695, %v665_v29  ;;  %896 = vmatpush.msra.mxu0 %v2033_v24  ;;  %v658_v1 = vsub.f32 5.0810614, %v642_v0  ;;  %v670_v63 = vsub.f32 %v654_v3, %v622_v40 }
  0x99   :  { %1183 = vpow2.f32 %v678_v5  ;;  %v686_v54 = vmul.f32 1.442695, %v666_v55  ;;  %v659_v10 = vsub.f32 5.0810614, %v643_v8  ;;  %v671_v13 = vsub.f32 %v655_v38, %v623_v22  ;;  %v124_v12 = vld [vmem:[%s2264_s4] sm:$0x1] }
  0x9a   :  { %1185 = vpow2.f32 %v680_v9  ;;  %v688_v53 = vmul.f32 1.442695, %v667_v27  ;;  %897 = vmatpush.msra.mxu0 %v2029_v49  ;;  %v660_v50 = vsub.f32 5.0810614, %v644_v61  ;;  %v672_v17 = vsub.f32 %v656_v60, %v624_v25  ;;  %s1441_s4 = smov [#allocation10]  }
  0x9b   :  { %1187 = vpow2.f32 %v682_v47  ;;  %v690_v24 = vmul.f32 1.442695, %v668_v19  ;;  %v661_v34 = vsub.f32 5.0810614, %v645_v59  ;;  %v673_v58 = vsub.f32 %v657_v42, %v625_v51  ;;  %s908_s6 = sshll.u32 %s1441_s4, 4  ;;  %s909_s6 = int_to_ptr.vmem [resolvable:$true] %s908_s6 }
  0x9c   :  { %1189 = vpow2.f32 %v684_v41  ;;  %v692_v62 = vmul.f32 1.442695, %v669_v15  ;;  %v674_v37 = vsub.f32 %v658_v1, %v626_v16  ;;  %v694_v32 = vmul.f32 1.442695, %v670_v63 }
  0x9d   :  { %1191 = vpow2.f32 %v686_v54  ;;  %v675_v49 = vsub.f32 %v659_v10, %v627_v31  ;;  %v696_v29 = vmul.f32 1.442695, %v671_v13  ;;  %v676_v8 = vsub.f32 %v660_v50, %v628_v23 }
  0x9e   :  { %1193 = vpow2.f32 %v688_v53  ;;  %v698_v3 = vmul.f32 1.442695, %v672_v17  ;;  %v677_v61 = vsub.f32 %v661_v34, %v629_v20  ;;  %v700_v38 = vmul.f32 1.442695, %v673_v58 }
  0x9f   :  { %v1184_v0 = vpop.eup %1183  ;;  %1195 = vpow2.f32 %v690_v24  ;;  %v702_v27 = vmul.f32 1.442695, %v674_v37  ;;  %v704_v9 = vmul.f32 1.442695, %v675_v49  ;;  %v706_v42 = vmul.f32 1.442695, %v676_v8 }
  0xa0   :  { %v1186_v55 = vpop.eup %1185  ;;  %1197 = vpow2.f32 %v692_v62  ;;  %v710_v19 = vmul.f32 0.5, %v1184_v0  ;;  %v708_v1 = vmul.f32 1.442695, %v677_v61  ;;  %vm827_vm1 = vcmask 1040384  }
  0xa1   :  { %v1188_v60 = vpop.eup %1187  ;;  %1199 = vpow2.f32 %v694_v32  ;;  %v711_v47 = vmul.f32 0.5, %v1186_v55  ;;  %v2204_v55 = vld [vmem:[%s2265_s5] sm:$0x1] }
  0xa2   :  { %v1190_v5 = vpop.eup %1189  ;;  %1201 = vpow2.f32 %v696_v29  ;;  %v712_v15 = vmul.f32 0.5, %v1188_v60  ;;  %v726_v13 = vadd.f32 0.5, %v710_v19  ;;  %v398_v28 = vmax.f32 %v2204_v55, 0.0 }
  0xa3   :  { %v1192_v59 = vpop.eup %1191  ;;  %1203 = vpow2.f32 %v698_v3  ;;  %v713_v63 = vmul.f32 0.5, %v1190_v5  ;;  %v727_v17 = vadd.f32 0.5, %v711_v47 }
  0xa4   :  { %v1194_v41 = vpop.eup %1193  ;;  %1205 = vpow2.f32 %v700_v38  ;;  %v714_v10 = vmul.f32 0.5, %v1192_v59  ;;  %v728_v58 = vadd.f32 0.5, %v712_v15 }
  0xa5   :  { %v1196_v54 = vpop.eup %1195  ;;  %1207 = vpow2.f32 %v702_v27  ;;  %v715_v50 = vmul.f32 0.5, %v1194_v41  ;;  %v729_v32 = vadd.f32 0.5, %v713_v63 }
  0xa6   :  { %v1198_v53 = vpop.eup %1197  ;;  %1209 = vpow2.f32 %v704_v9  ;;  %v716_v34 = vmul.f32 0.5, %v1196_v54  ;;  %v730_v29 = vadd.f32 0.5, %v714_v10  ;;  %v399_v9 = vand.u32 2147483647, %v2204_v55 }
  0xa7   :  { %v1200_v24 = vpop.eup %1199  ;;  %1211 = vpow2.f32 %v706_v42  ;;  %v717_v37 = vmul.f32 0.5, %v1198_v53  ;;  %v731_v3 = vadd.f32 0.5, %v715_v50 }
  0xa8   :  { %v1202_v62 = vpop.eup %1201  ;;  %1213 = vpow2.f32 %v708_v1  ;;  %v718_v8 = vmul.f32 0.5, %v1200_v24  ;;  %v732_v38 = vadd.f32 0.5, %v716_v34  ;;  %v400_v50 = vsub.f32 0.0, %v399_v9 }
  0xa9   :  { %v1204_v49 = vpop.eup %1203  ;;  %1215 = vlog2.f32 %v726_v13  ;;  %v719_v27 = vmul.f32 0.5, %v1202_v62  ;;  %v733_v19 = vadd.f32 0.5, %v717_v37 }
  0xaa   :  { %v1206_v0 = vpop.eup %1205  ;;  %1217 = vlog2.f32 %v727_v17  ;;  %v720_v59 = vmul.f32 0.5, %v1204_v49  ;;  %v734_v42 = vadd.f32 0.5, %v718_v8 }
  0xab   :  { %v1208_v61 = vpop.eup %1207  ;;  %1219 = vlog2.f32 %v728_v58  ;;  %v721_v1 = vmul.f32 0.5, %v1206_v0  ;;  %v735_v63 = vadd.f32 0.5, %v719_v27 }
  0xac   :  { %v1210_v60 = vpop.eup %1209  ;;  %1221 = vlog2.f32 %v729_v32  ;;  %v722_v13 = vmul.f32 0.5, %v1208_v61  ;;  %v736_v24 = vadd.f32 0.5, %v720_v59 }
  0xad   :  { %v1212_v5 = vpop.eup %1211  ;;  %1223 = vlog2.f32 %v730_v29  ;;  %v723_v37 = vmul.f32 0.5, %v1210_v60  ;;  %v737_v0 = vadd.f32 0.5, %v721_v1 }
  0xae   :  { %v1214_v47 = vpop.eup %1213  ;;  %1225 = vlog2.f32 %v731_v3  ;;  %v724_v60 = vmul.f32 0.5, %v1212_v5  ;;  %v738_v9 = vadd.f32 0.5, %v722_v13 }
  0xaf   :  { %v1216_v15 = vpop.eup %1215  ;;  %1227 = vlog2.f32 %v732_v38  ;;  %v739_v57 = vadd.f32 0.5, %v723_v37 }
  0xb0   :  { %v1218_v41 = vpop.eup %1217  ;;  %v743_v54 = vmul.f32 0.6931472, %v1216_v15  ;;  %1229 = vlog2.f32 %v733_v19  ;;  %v725_v15 = vmul.f32 0.5, %v1214_v47  ;;  %v740_v1 = vadd.f32 0.5, %v724_v60 }
  0xb1   :  { %v1220_v10 = vpop.eup %1219  ;;  %v745_v53 = vmul.f32 0.6931472, %v1218_v41  ;;  %1231 = vlog2.f32 %v734_v42 }
  0xb2   :  { %v1222_v17 = vpop.eup %1221  ;;  %v747_v34 = vmul.f32 0.6931472, %v1220_v10  ;;  %v774_v58 = vadd.f32 %v743_v54, %v614_v52  ;;  %1233 = vlog2.f32 %v735_v63  ;;  %v401_v52 = vmul.f32 1.442695, %v400_v50 }
  0xb3   :  { %v1224_v62 = vpop.eup %1223  ;;  %v749_v32 = vmul.f32 0.6931472, %v1222_v17  ;;  %v775_v49 = vadd.f32 %v745_v53, %v615_v45  ;;  %1235 = vlog2.f32 %v736_v24  ;;  %v741_v54 = vadd.f32 0.5, %v725_v15 }
  0xb4   :  { %v1226_v29 = vpop.eup %1225  ;;  %v751_v8 = vmul.f32 0.6931472, %v1224_v62  ;;  %v776_v3 = vadd.f32 %v747_v34, %v616_v4  ;;  %1237 = vlog2.f32 %v737_v0 }
  0xb5   :  { %v1228_v61 = vpop.eup %1227  ;;  %v753_v38 = vmul.f32 0.6931472, %v1226_v29  ;;  %v777_v27 = vadd.f32 %v749_v32, %v617_v48  ;;  %v790_v14 = vadd.f32 %v775_v49, %v774_v58  ;;  %1239 = vpow2.f32 %v401_v52 }
  0xb6   :  { %v1230_v19 = vpop.eup %1229  ;;  %v755_v44 = vmul.f32 0.6931472, %v1228_v61  ;;  %v778_v45 = vadd.f32 %v751_v8, %v618_v21  ;;  %1241 = vlog2.f32 %v738_v9 }
  0xb7   :  { %v791_v59 = vadd.f32 %v790_v14, %v776_v3  ;;  %v1232_v42 = vpop.eup %1231  ;;  %v757_v4 = vmul.f32 0.6931472, %v1230_v19  ;;  %v779_v56 = vadd.f32 %v753_v38, %v619_v2  ;;  %1243 = vlog2.f32 %v739_v57 }
  0xb8   :  { %v1234_v41 = vpop.eup %1233  ;;  %v759_v5 = vmul.f32 0.6931472, %v1232_v42  ;;  %v780_v63 = vadd.f32 %v755_v44, %v620_v39  ;;  %1245 = vlog2.f32 %v740_v1  ;;  %v878_v42 = vld [vmem:[#allocation2] sm:$0xff] }
  0xb9   :  { %v792_v48 = vadd.f32 %v791_v59, %v777_v27  ;;  %v1236_v21 = vpop.eup %1235  ;;  %v761_v47 = vmul.f32 0.6931472, %v1234_v41  ;;  %v781_v10 = vadd.f32 %v757_v4, %v621_v30  ;;  %1247 = vlog2.f32 %v741_v54  ;;  %898 = vmatmul.f32.vlgmr.msra.gmra.mxu0 %v878_v42 }
  0xba   :  { %v1238_v7 = vpop.eup %1237  ;;  %v763_v53 = vmul.f32 0.6931472, %v1236_v21  ;;  %v782_v50 = vadd.f32 %v759_v5, %v622_v40 }
  0xbb   :  { %v793_v43 = vadd.f32 %v792_v48, %v778_v45  ;;  %v1240_v2 = vpop.eup %1239  ;;  %v765_v34 = vmul.f32 0.6931472, %v1238_v7  ;;  %v783_v58 = vadd.f32 %v761_v47, %v623_v22  ;;  %v579_v45 = vmul.f32 0.5, %v445_v35 }
  0xbc   :  { %v1242_v24 = vpop.eup %1241  ;;  %v403_v11 = vadd.f32 1.0, %v1240_v2  ;;  %v406_v39 = vmul.f32 -0.5, %v1240_v2  ;;  %v784_v37 = vadd.f32 %v763_v53, %v624_v25  ;;  %v409_v40 = vand.u32 2147483647, %v1240_v2 }
  0xbd   :  { %v794_v13 = vadd.f32 %v793_v43, %v779_v56  ;;  %v1244_v36 = vpop.eup %1243  ;;  %v767_v30 = vmul.f32 0.6931472, %v1242_v24  ;;  %v785_v0 = vadd.f32 %v765_v34, %v625_v51  ;;  %v580_v4 = vmul.f32 %v579_v45, %v445_v35 }
  0xbe   :  { %1249 = vlog2.f32 %v403_v11  ;;  %v407_v49 = vadd.f32 1.0, %v406_v39  ;;  %v1246_v33 = vpop.eup %1245  ;;  %v769_v29 = vmul.f32 0.6931472, %v1244_v36  ;;  %vm410_vm0 = vcmp.lt.f32.partialorder %v409_v40, 0.0004427343 }
  0xbf   :  { %v795_v17 = vadd.f32 %v794_v13, %v780_v63  ;;  %v1248_v3 = vpop.eup %1247  ;;  %v771_v61 = vmul.f32 0.6931472, %v1246_v33  ;;  %v786_v6 = vadd.f32 %v767_v30, %v626_v16 }
  0xc0   :  { %v408_v38 = vmul.f32 %v1240_v2, %v407_v49  ;;  %v773_v25 = vmul.f32 0.6931472, %v1248_v3  ;;  %v787_v14 = vadd.f32 %v769_v29, %v627_v31 }
  0xc1   :  { %v796_v62 = vadd.f32 %v795_v17, %v781_v10  ;;  %v788_v26 = vadd.f32 %v771_v61, %v628_v23 }
  0xc2   :  { %v789_v55 = vadd.f32 %v773_v25, %v629_v20 }
  0xc3   :  { %v797_v32 = vadd.f32 %v796_v62, %v782_v50 }
  0xc4   :  { %v1250_v27 = vpop.eup %1249 }
  0xc5   :  { %v798_v8 = vadd.f32 %v797_v32, %v783_v58  ;;  %v405_v19 = vmul.f32 0.6931472, %v1250_v27 }
  0xc7   :  { %v799_v22 = vadd.f32 %v798_v8, %v784_v37  ;;  %v411_v60 = vsel %vm410_vm0, %v408_v38, %v405_v19 }
  0xc8   :  { %v412_v16 = vadd.f32 %v411_v60, %v398_v28 }
  0xc9   :  { %v800_v52 = vadd.f32 %v799_v22, %v785_v0 }
  0xca   :  { %v478_v31 = vmul.f32 %v445_v35, %v412_v16  ;;  %1251 = vlog2.f32 %v412_v16 }
  0xcb   :  { %v801_v51 = vadd.f32 %v800_v52, %v786_v6 }
  0xcc   :  { %v2246_v46 = vadd.f32 %v478_v31, %v124_v12 }
  0xcd   :  { %v802_v9 = vadd.f32 %v801_v51, %v787_v14 }
  0xce   :  { %v814_v59 = vmul.f32 %v2246_v46, %v2246_v46  ;;  %v880_v52 = vperm.slane %v2246_v46, 0 }
  0xcf   :  { %v803_v44 = vadd.f32 %v802_v9, %v788_v26 }
  0xd0   :  { %v1252_v15 = vpop.eup %1251  ;;  %v815_v18 = vmul.f32 0.5, %v814_v59  ;;  %v817_v20 = vmul.f32 81377.4, %v814_v59 }
  0xd1   :  { %v804_v23 = vadd.f32 %v803_v44, %v789_v55  ;;  %v577_v57 = vmul.f32 0.6931472, %v1252_v15 }
  0xd2   :  { %v816_v56 = vsub.f32 -0.9189385, %v815_v18  ;;  %v818_v48 = vsub.f32 5.0810614, %v817_v20 }
  0xd3   :  { %805 = vadd.xlane.f32.xlu0 %v804_v23  ;;  %v578_v41 = vsub.f32 -0.9189385, %v577_v57 }
  0xd4   :  { %v819_v1 = vsub.f32 %v818_v48, %v816_v56 }
  0xd5   :  { %v581_v5 = vsub.f32 %v578_v41, %v580_v4 }
  0xd6   :  { %v820_v63 = vmul.f32 1.442695, %v819_v1 }
  0xd7   :  { %v863_v43 = vsel %vm827_vm1, %v581_v5, 0.0 }
  0xd8   :  { %864 = vadd.xlane.f32.xlu1 %v863_v43  ;;  %1253 = vpow2.f32 %v820_v63 }
  0xde   :  { %v1254_v21 = vpop.eup %1253 }
  0xdf   :  { %v822_v54 = vmul.f32 0.5, %v1254_v21 }
  0xe1   :  { %v823_v47 = vadd.f32 0.5, %v822_v54 }
  0xe3   :  { %1255 = vlog2.f32 %v823_v47 }
  0xe9   :  { %v1256_v10 = vpop.eup %1255 }
  0xea   :  { %v825_v13 = vmul.f32 0.6931472, %v1256_v10 }
  0xec   :  { %v826_v7 = vadd.f32 %v825_v13, %v816_v56 }
  0xee   :  { %v828_v2 = vsel %vm827_vm1, %v826_v7, 0.0 }
  0xef   :  { %829 = vadd.xlane.f32.xlu0 %v828_v2 }
  0xff   :  { %v855_v58 = vpop.xlane.xlu1 %854 }
 0x100   :  { %v856_v36 = vrot.slane %v855_v58, 4 }
 0x102   :  { %v857_v37 = vadd.f32 %v856_v36, %v855_v58 }
 0x104   :  { %v858_v49 = vrot.slane %v857_v37, 2 }
 0x106   :  { %v859_v8 = vadd.f32 %v858_v49, %v857_v37 }
 0x108   :  { %v860_v22 = vrot.slane %v859_v8, 1 }
 0x10a   :  { %v861_v25 = vadd.f32 %v860_v22, %v859_v8 }
 0x136   :  { %v899_v19 = vpop.f32.mrf.mxu0 }
 0x137   :  { %v900_v26 = vadd.f32 %v899_v19, %v880_v52 }
 0x139   :  { %902 = vst [vmem:[#allocation10] sm:$0xff] %v900_v26 }
 0x13a   :  { %913 = dma.vmem_to_hbm [thread:$0]  %s909_s6, 128, %s911_s13, [#allocation4]  }
 0x146   :  { %v806_v53 = vpop.xlane.xlu0 %805 }
 0x147   :  { %v807_v50 = vrot.slane %v806_v53, 4 }
 0x149   :  { %v808_v17 = vadd.f32 %v807_v50, %v806_v53 }
 0x14b   :  { %v809_v24 = vrot.slane %v808_v17, 2  ;;  %v865_v62 = vpop.xlane.xlu1 %864 }
 0x14c   :  { %v866_v30 = vrot.slane %v865_v62, 4 }
 0x14d   :  { %v810_v11 = vadd.f32 %v809_v24, %v808_v17 }
 0x14e   :  { %v867_v32 = vadd.f32 %v866_v30, %v865_v62 }
 0x14f   :  { %v811_v39 = vrot.slane %v810_v11, 1 }
 0x150   :  { %v868_v40 = vrot.slane %v867_v32, 2 }
 0x151   :  { %v812_v34 = vadd.f32 %v811_v39, %v810_v11 }
 0x152   :  { %v869_v3 = vadd.f32 %v868_v40, %v867_v32 }
 0x153   :  { %1070 = vpush %v812_v34 }
 0x154   :  { %v870_v27 = vrot.slane %v869_v3, 1 }
 0x156   :  { %v871_v14 = vadd.f32 %v870_v27, %v869_v3 }
 0x162   :  { %v830_v33 = vpop.xlane.xlu0 %829 }
 0x163   :  { %v831_v29 = vrot.slane %v830_v33, 4 }
 0x165   :  { %v832_v0 = vadd.f32 %v831_v29, %v830_v33 }
 0x167   :  { %v833_v61 = vrot.slane %v832_v0, 2 }
 0x169   :  { %v834_v6 = vadd.f32 %v833_v61, %v832_v0 }
 0x16b   :  { %v835_v38 = vrot.slane %v834_v6, 1 }
 0x16d   :  { %v836_v28 = vadd.f32 %v835_v38, %v834_v6 }
 0x16f   :  { %1072 = vpush %v836_v28 }
 0x170   :  { %1074 = vpush %v861_v25 }
 0x171   :  { %1076 = vpush %v871_v14 }
 0x184   :  { %s1071_s19 = spop %1070 }
 0x1a0   :  { %s1073_s22 = spop %1072 }
 0x1a1   :  { %s838_s24 = sadd.f32 %s1073_s22, %s1071_s19  ;;  %s1075_s25 = spop %1074 }
 0x1a2   :  { %s1077_s26 = spop %1076 }
 0x1a3   :  { %v874_v51 = vstv %s838_s24  ;;  %s873_s27 = sadd.f32 %s1077_s26, %s1075_s25 }
 0x1a4   :  { %875 = vst [vmem:[#allocation11] sm:$0xff] %v874_v51 }
 0x1a5   :  { %v876_v60 = vstv %s873_s27  ;;  %924 = dma.vmem_to_hbm [thread:$0]  %s920_s15, 128, %s922_s18, [#allocation12]  }
 0x1a6   :  { %877 = vst [vmem:[#allocation13] sm:$0xff] %v876_v60 }
 0x1a7   :  { %935 = dma.vmem_to_hbm [thread:$0]  %s931_s21, 128, %s933_s1, [#allocation12]  }
 0x1a8   :  { %1431 = dma.done.wait [#allocation4], 128  }
 0x1a9   :  { %1432 = vsyncadd [#allocation4], 4294967168 }
 0x1aa   :  { %1433 = dma.done.wait [#allocation12], 256  }
 0x1ab   :  { %1434 = vsyncadd [#allocation12], 4294967040 }
 0x1ac   :  { %948 = vsyncpa [#allocation3], 1 }
 0x1ad   :  { %949 = vsyncpa [#allocation6], 1 }
 0x1ae   :  { %950 = vsyncpa [#allocation9], 1 }
 0x1af   :  { %951 = vsyncpa [#allocation4], 1 }
 0x1b0   :  { %952 = vsyncpa [#allocation12], 1 }

</bundles_post_ra>
